<compile_context>
chip_gen: v7x
topology: tpu7x:2x2x1
jax: 0.10.0
libtpu: 0.0.40
codegen_flags: <defaults>
</compile_context>

<pallas_src>
import math
import numpy as np
import jax
import jax.numpy as jnp
from jax import lax
from jax.experimental import pallas as pl
from jax.experimental.pallas import tpu as pltpu

# ----- module hyper-parameters (KANConv2DLayer-style) -----
NDIM = 2
IN_CHANNELS = 4
OUT_CHANNELS = 8
GROUPS = 2
KERNEL_SIZE = 3
STRIDE = 1
PADDING = 1
DILATION = 1
GRID_SIZE = 5
SPLINE_ORDER = 3
GRID_RANGE = (-1.0, 1.0)
EPS = 1e-5                                          # InstanceNorm2d default eps

CIN_G = IN_CHANNELS // GROUPS                       # 2
COUT_G = OUT_CHANNELS // GROUPS                     # 4
K_BASES = GRID_SIZE + SPLINE_ORDER                  # 8 spline basis channels
N_KINDS = 1 + K_BASES                               # 9 feature kinds (GELU + 8 bases)
N_TAPS = KERNEL_SIZE * KERNEL_SIZE                  # 9 conv taps
C_SLOT = 8                                          # channel slots per kind (4 real, sublane-aligned)
KIND_ROWS = N_KINDS * C_SLOT                        # 72
FUSED_K = N_TAPS * KIND_ROWS                        # 648: fused matmul reduce dim

_h = (GRID_RANGE[1] - GRID_RANGE[0]) / GRID_SIZE
# B-spline knot grid: baked as compile-time Python constants into the kernel.
GRID = tuple(
    float(v)
    for v in np.linspace(
        GRID_RANGE[0] - _h * SPLINE_ORDER,
        GRID_RANGE[1] + _h * SPLINE_ORDER,
        GRID_SIZE + 2 * SPLINE_ORDER + 1,
    )
)

_INV_SQRT2 = 1.0 / math.sqrt(2.0)
# Abramowitz & Stegun 7.1.26 erf approximation (max abs error 1.5e-7).
_ERF_P = 0.3275911
_ERF_A = (0.254829592, -0.284496736, 1.421413741, -1.453152027, 1.061405429)


def _gelu_erf_poly(x):
    """erf-based GELU; rational term routed through pl.reciprocal (EUP slot)."""
    z = x * _INV_SQRT2
    az = jnp.abs(z)
    t = pl.reciprocal(1.0 + _ERF_P * az, approx=False)
    a1, a2, a3, a4, a5 = _ERF_A
    poly = t * (a1 + t * (a2 + t * (a3 + t * (a4 + t * a5))))
    erf_abs = 1.0 - poly * jnp.exp(-az * az)
    erf = jnp.where(z >= 0.0, erf_abs, -erf_abs)
    return 0.5 * x * (1.0 + erf)


def _gelu_exact(x):
    # Matches torch.nn.GELU() default (erf-based).  XLA reference path only.
    return 0.5 * x * (1.0 + lax.erf(x * _INV_SQRT2))


def _spline_bases(x):
    """Cox-de-Boor recursion up to SPLINE_ORDER on the raw activations.

    Rearrangement: (g_{j+k+1}-x)/(g_{j+k+1}-g_{j+1}) == 1 - u_{j+1} with
    u_j = (x-g_j)/(g_{j+k}-g_j); the u_j*b_j product is carried between
    neighbouring bases -> ~5 VALU ops per new basis instead of ~7."""
    prev = jnp.where(x >= GRID[0], 1.0, 0.0)
    bases = []
    for j in range(len(GRID) - 1):
        cur = jnp.where(x >= GRID[j + 1], 1.0, 0.0)
        bases.append(prev - cur)                      # == (x >= g_j) & (x < g_{j+1})
        prev = cur
    for k in range(1, SPLINE_ORDER + 1):
        n_b = len(bases)
        inv = [1.0 / (GRID[j + k] - GRID[j]) for j in range(n_b)]
        v_prev = ((x - GRID[0]) * inv[0]) * bases[0]
        nxt = []
        for j in range(n_b - 1):
            v_next = ((x - GRID[j + 1]) * inv[j + 1]) * bases[j + 1]
            nxt.append(v_prev + (bases[j + 1] - v_next))
            v_prev = v_next
        bases = nxt                                   # length shrinks by 1 per order
    return bases                                      # K_BASES arrays shaped like x


def _lane_roll(v, shift, n):
    """v[..., l] -> v[..., (l + shift) % n] via static lane slices + concat."""
    s = shift % n
    if s == 0:
        return v
    return jnp.concatenate([v[:, s:], v[:, :s]], axis=1)


# ---------------------------------------------------------------------------
# Pallas kernel: one batch sample per grid step.
# Refs:
#   prelu_ref : (1,) f32 in SMEM               -- PReLU slope
#   x_ref     : (IN_CHANNELS, HW) f32          -- raw input tile (no im2col)
#   mask_ref  : (N_TAPS, 1, HW) f32            -- per-tap border-validity mask
#   w_ref     : (OUT_CHANNELS, FUSED_K) f32    -- fused [base|spline] x taps weight
#   o_ref     : (OUT_CHANNELS, HW) f32         -- normalized + PReLU output
#   feat_ref  : (KIND_ROWS, HW) f32 scratch    -- staged per-pixel features
#   fmat_ref  : (FUSED_K, HW) f32 scratch      -- in-kernel im2col of the features
# ---------------------------------------------------------------------------
def make_kan_kernel(h, w):
    hw = h * w
    shifts = [(dh - PADDING) * w + (dw - PADDING)
              for dh in range(KERNEL_SIZE) for dw in range(KERNEL_SIZE)]

    def kan_kernel(prelu_ref, x_ref, mask_ref, w_ref, o_ref, feat_ref, fmat_ref):
        # ---- feature stage on the RAW (CIN, HW) tile: GELU + 8 spline bases ----
        x = x_ref[...]                                           # (IN_CHANNELS, hw)
        feat_ref[...] = jnp.zeros((KIND_ROWS, hw), jnp.float32)  # clear padded channel slots
        feat_ref[0:IN_CHANNELS, :] = _gelu_erf_poly(x)
        bases = _spline_bases(x)
        for q in range(K_BASES):
            off = (1 + q) * C_SLOT
            feat_ref[off:off + IN_CHANNELS, :] = bases[q]

        # ---- in-kernel im2col of the FEATURES: 9 static lane rolls + mask ----
        # Tap (dh, dw) at output lane l reads feature lane l + s (s = tap shift);
        # lanes whose tap falls into the conv zero-padding are zeroed by mask.
        fa = feat_ref[...]                                       # (KIND_ROWS, hw)
        for t, s in enumerate(shifts):
            m = mask_ref[t]                                      # (1, hw) 0/1 validity
            fmat_ref[t * KIND_ROWS:(t + 1) * KIND_ROWS, :] = _lane_roll(fa, s, hw) * m

        # ---- fused base+spline conv for BOTH groups: one MXU matmul ----
        acc = jnp.dot(w_ref[...], fmat_ref[...],
                      preferred_element_type=jnp.float32)        # (OUT_CHANNELS, hw)

        # ---- InstanceNorm2d (affine=False), single pass, + shared PReLU ----
        inv_hw = 1.0 / hw
        mean = jnp.sum(acc, axis=1, keepdims=True) * inv_hw
        var = jnp.sum(acc * acc, axis=1, keepdims=True) * inv_hw - mean * mean
        y = (acc - mean) * lax.rsqrt(var + EPS)
        a = prelu_ref[0]
        y = jnp.where(y >= 0.0, y, a * y)
        o_ref[...] = y.astype(o_ref.dtype)

    return kan_kernel


# ---------------------------------------------------------------------------
# Glue: tap masks, fused weight re-layout, pallas_call, output reshape
# ---------------------------------------------------------------------------
def _tap_masks(h, w):
    hw = h * w
    mask = np.zeros((N_TAPS, 1, hw), np.float32)
    for dh in range(KERNEL_SIZE):
        for dw in range(KERNEL_SIZE):
            t = dh * KERNEL_SIZE + dw
            ii = np.arange(h)[:, None] + (dh - PADDING)
            jj = np.arange(w)[None, :] + (dw - PADDING)
            valid = (ii >= 0) & (ii < h) & (jj >= 0) & (jj < w)
            mask[t, 0] = valid.astype(np.float32).reshape(hw)
    return jnp.asarray(mask)


def _fuse_weights(wb_orig, ws_orig):
    """(OUT_CHANNELS, FUSED_K); col = tap*72 + kind*8 + channel_slot.
    Weights are shared across groups (ModuleList([conv]*groups)); each group's
    output rows only see that group's channel slots (block-diagonal)."""
    wb_k = wb_orig.reshape(COUT_G, CIN_G, N_TAPS)[None]                            # (1,o,c,t)
    ws_k = ws_orig.reshape(COUT_G, CIN_G, K_BASES, N_TAPS).transpose(2, 0, 1, 3)   # (q,o,c,t)
    w_kinds = jnp.concatenate([wb_k, ws_k], axis=0)                                # (9,o,c,t)
    w_perm = jnp.transpose(w_kinds, (1, 3, 0, 2))                                  # (o,t,q,c)
    wf = jnp.zeros((OUT_CHANNELS, N_TAPS, N_KINDS, C_SLOT), jnp.float32)
    for g in range(GROUPS):
        wf = wf.at[g * COUT_G:(g + 1) * COUT_G, :, :,
                   g * CIN_G:(g + 1) * CIN_G].set(w_perm)
    return wf.reshape(OUT_CHANNELS, FUSED_K)


def kan_conv2d_forward(x, wb_orig, ws_orig, prelu_w):
    """x: (N, IN_CHANNELS, H, W) f32 -> (N, OUT_CHANNELS, H, W) f32."""
    n, cin, h, w = x.shape
    assert cin == IN_CHANNELS and STRIDE == 1 and DILATION == 1 and PADDING == 1
    hw = h * w

    x_flat = x.reshape(n, IN_CHANNELS, hw)          # raw input only: ~1x HBM read
    mask = _tap_masks(h, w)
    w_fused = _fuse_weights(wb_orig, ws_orig)

    out = pl.pallas_call(
        make_kan_kernel(h, w),
        out_shape=jax.ShapeDtypeStruct((n, OUT_CHANNELS, hw), jnp.float32),
        grid=(n,),
        in_specs=[
            pl.BlockSpec(memory_space=pltpu.MemorySpace.SMEM),               # prelu (1,)
            pl.BlockSpec((None, IN_CHANNELS, hw), lambda b: (b, 0, 0)),      # raw x tile
            pl.BlockSpec((N_TAPS, 1, hw), lambda b: (0, 0, 0)),              # tap masks (grid-invariant)
            pl.BlockSpec((OUT_CHANNELS, FUSED_K), lambda b: (0, 0)),         # fused weight
        ],
        out_specs=pl.BlockSpec((None, OUT_CHANNELS, hw), lambda b: (b, 0, 0)),
        scratch_shapes=[
            pltpu.VMEM((KIND_ROWS, hw), jnp.float32),    # staged per-pixel features
            pltpu.VMEM((FUSED_K, hw), jnp.float32),      # fused matmul RHS
        ],
        compiler_params=pltpu.CompilerParams(
            dimension_semantics=("parallel",)),
        # NOTE: at these toy shapes VMEM use is <1 MiB; when scaling H*W (esp.
        # on v7x's 64 MiB VMEM), tile the lane/spatial dim and raise
        # vmem_limit_bytes explicitly.
    )(prelu_w, x_flat, mask, w_fused)

    # Rows are already [g0c0..g0c3, g1c0..g1c3] = NCHW channel order of the
    # PyTorch group concat -> plain reshape, no transpose pass.
    return out.reshape(n, OUT_CHANNELS, h, w)


# ---------------------------------------------------------------------------
# Pure-JAX reference (mirrors the PyTorch forward) for self-validation
# ---------------------------------------------------------------------------
def reference_forward(x, wb_orig, ws_orig, prelu_w):
    gvec = jnp.asarray(GRID, jnp.float32)
    outs = []
    for g in range(GROUPS):
        xg = x[:, g * CIN_G:(g + 1) * CIN_G]
        base = lax.conv_general_dilated(
            _gelu_exact(xg), wb_orig,
            window_strides=(STRIDE, STRIDE),
            padding=((PADDING, PADDING), (PADDING, PADDING)),
            rhs_dilation=(DILATION, DILATION),
            dimension_numbers=('NCHW', 'OIHW', 'NCHW'))
        xe = xg[..., None]
        b = ((xe >= gvec[:-1]) & (xe < gvec[1:])).astype(x.dtype)
        for k in range(1, SPLINE_ORDER + 1):
            left = gvec[:-(k + 1)]
            right = gvec[k:-1]
            delta = jnp.where(right == left, jnp.ones_like(right), right - left)
            b = ((xe - left) / delta * b[..., :-1]
                 + (gvec[k + 1:] - xe) / (gvec[k + 1:] - gvec[1:-k]) * b[..., 1:])
        n_, c_, h_, w_, kb = b.shape
        b = jnp.moveaxis(b, -1, 2).reshape(n_, c_ * kb, h_, w_)
        spline = lax.conv_general_dilated(
            b, ws_orig,
            window_strides=(STRIDE, STRIDE),
            padding=((PADDING, PADDING), (PADDING, PADDING)),
            rhs_dilation=(DILATION, DILATION),
            dimension_numbers=('NCHW', 'OIHW', 'NCHW'))
        y = base + spline
        mean = y.mean(axis=(2, 3), keepdims=True)
        var = ((y - mean) ** 2).mean(axis=(2, 3), keepdims=True)
        y = (y - mean) / jnp.sqrt(var + EPS)
        y = jnp.where(y >= 0.0, y, prelu_w[0] * y)
        outs.append(y)
    return jnp.concatenate(outs, axis=1)


if __name__ == "__main__":
    key = jax.random.PRNGKey(0)
    k1, k2, k3 = jax.random.split(key, 3)
    N, H, W = 2, 16, 16

    # Deterministic parameter init (kaiming_uniform_, nonlinearity='linear' -> gain=1)
    fan_in_base = CIN_G * KERNEL_SIZE * KERNEL_SIZE
    bound_b = math.sqrt(3.0) / math.sqrt(fan_in_base)
    wb_orig = jax.random.uniform(k1, (COUT_G, CIN_G, KERNEL_SIZE, KERNEL_SIZE),
                                 jnp.float32, -bound_b, bound_b)
    fan_in_sp = (CIN_G * K_BASES) * KERNEL_SIZE * KERNEL_SIZE
    bound_s = math.sqrt(3.0) / math.sqrt(fan_in_sp)
    ws_orig = jax.random.uniform(k2, (COUT_G, CIN_G * K_BASES, KERNEL_SIZE, KERNEL_SIZE),
                                 jnp.float32, -bound_s, bound_s)
    prelu_w = jnp.array([0.25], jnp.float32)      # nn.PReLU() default init

    x = jax.random.normal(k3, (N, IN_CHANNELS, H, W), jnp.float32)

    y = jax.block_until_ready(kan_conv2d_forward(x, wb_orig, ws_orig, prelu_w))
    y_ref = jax.block_until_ready(reference_forward(x, wb_orig, ws_orig, prelu_w))

    assert y.shape == (N, OUT_CHANNELS, H, W), y.shape
    assert bool(jnp.all(jnp.isfinite(y)))
    np.testing.assert_allclose(np.asarray(y), np.asarray(y_ref), rtol=2e-4, atol=2e-4)
    print("KERNEL_OK")
</pallas_src>

<mosaic_0001>
module attributes {stable_mosaic.version = 11 : i64} {
  func.func @kan_kernel(%arg0: i32, %arg1: memref<1xf32, #tpu.memory_space<smem>>, %arg2: memref<1x4x256xf32, #tpu.memory_space<vmem>>, %arg3: memref<9x1x256xf32, #tpu.memory_space<vmem>>, %arg4: memref<8x648xf32, #tpu.memory_space<vmem>>, %arg5: memref<1x8x256xf32, #tpu.memory_space<vmem>>, %arg6: memref<72x256xf32, #tpu.memory_space<vmem>>, %arg7: memref<648x256xf32, #tpu.memory_space<vmem>>) attributes {dimension_semantics = [#tpu.dimension_semantics<parallel>], iteration_bounds = array<i64: 2>, scalar_prefetch = 0 : i64, scratch_operands = 2 : i64, tpu.core_type = #tpu.core_type<tc>, window_params = [{transform_indices = @transform_0, window_bounds = array<i64: 1>}, {transform_indices = @transform_1, window_bounds = array<i64: 1, 4, 256>}, {pipeline_mode = #tpu.pipeline_mode<synchronous>, transform_indices = @transform_2, window_bounds = array<i64: 9, 1, 256>}, {pipeline_mode = #tpu.pipeline_mode<synchronous>, transform_indices = @transform_3, window_bounds = array<i64: 8, 648>}, {transform_indices = @transform_4, window_bounds = array<i64: 1, 8, 256>}]} {
    %c0 = arith.constant 0 : index
    %c0_0 = arith.constant 0 : index
    %c0_1 = arith.constant 0 : index
    %0 = vector.load %arg2[%c0, %c0_0, %c0_1] : memref<1x4x256xf32, #tpu.memory_space<vmem>>, vector<1x4x256xf32>
    %1 = vector.shape_cast %0 : vector<1x4x256xf32> to vector<4x256xf32>
    %cst = arith.constant 0.000000e+00 : f32
    %2 = vector.broadcast %cst : f32 to vector<72x256xf32>
    %c0_2 = arith.constant 0 : index
    %c0_3 = arith.constant 0 : index
    %3 = vector.load %arg6[%c0_2, %c0_3] : memref<72x256xf32, #tpu.memory_space<vmem>>, vector<72x256xf32>
    tpu.vector_store %arg6[%c0_2, %c0_3], %2 {strides = array<i32>} : memref<72x256xf32, #tpu.memory_space<vmem>>, vector<72x256xf32>,
    %cst_4 = arith.constant 0.707106769 : f32
    %4 = vector.broadcast %cst_4 : f32 to vector<4x256xf32>
    %5 = arith.mulf %1, %4 : vector<4x256xf32>
    %6 = math.absf %5 : vector<4x256xf32>
    %cst_5 = arith.constant 0.327591091 : f32
    %7 = vector.broadcast %cst_5 : f32 to vector<4x256xf32>
    %8 = arith.mulf %7, %6 : vector<4x256xf32>
    %cst_6 = arith.constant 1.000000e+00 : f32
    %9 = vector.broadcast %cst_6 : f32 to vector<4x256xf32>
    %10 = arith.addf %9, %8 : vector<4x256xf32>
    %11 = tpu.reciprocal %10 : vector<4x256xf32> -> vector<4x256xf32>
    %cst_7 = arith.constant 1.06140542 : f32
    %12 = vector.broadcast %cst_7 : f32 to vector<4x256xf32>
    %13 = arith.mulf %11, %12 : vector<4x256xf32>
    %cst_8 = arith.constant -1.45315206 : f32
    %14 = vector.broadcast %cst_8 : f32 to vector<4x256xf32>
    %15 = arith.addf %14, %13 : vector<4x256xf32>
    %16 = arith.mulf %11, %15 : vector<4x256xf32>
    %cst_9 = arith.constant 1.42141378 : f32
    %17 = vector.broadcast %cst_9 : f32 to vector<4x256xf32>
    %18 = arith.addf %17, %16 : vector<4x256xf32>
    %19 = arith.mulf %11, %18 : vector<4x256xf32>
    %cst_10 = arith.constant -0.284496725 : f32
    %20 = vector.broadcast %cst_10 : f32 to vector<4x256xf32>
    %21 = arith.addf %20, %19 : vector<4x256xf32>
    %22 = arith.mulf %11, %21 : vector<4x256xf32>
    %cst_11 = arith.constant 0.254829586 : f32
    %23 = vector.broadcast %cst_11 : f32 to vector<4x256xf32>
    %24 = arith.addf %23, %22 : vector<4x256xf32>
    %25 = arith.mulf %11, %24 : vector<4x256xf32>
    %cst_12 = arith.constant 0.000000e+00 : f32
    %26 = vector.broadcast %cst_12 : f32 to vector<4x256xf32>
    %27 = arith.subf %26, %6 : vector<4x256xf32>
    %28 = arith.mulf %27, %6 : vector<4x256xf32>
    %29 = math.exp %28 : vector<4x256xf32>
    %30 = arith.mulf %25, %29 : vector<4x256xf32>
    %cst_13 = arith.constant 1.000000e+00 : f32
    %31 = vector.broadcast %cst_13 : f32 to vector<4x256xf32>
    %32 = arith.subf %31, %30 : vector<4x256xf32>
    %cst_14 = arith.constant 0.000000e+00 : f32
    %33 = vector.broadcast %cst_14 : f32 to vector<4x256xf32>
    %34 = arith.cmpf oge, %5, %33 : vector<4x256xf32>
    %cst_15 = arith.constant 0.000000e+00 : f32
    %35 = vector.broadcast %cst_15 : f32 to vector<4x256xf32>
    %36 = arith.subf %35, %32 : vector<4x256xf32>
    %37 = arith.select %34, %32, %36 : vector<4x256xi1>, vector<4x256xf32>
    %cst_16 = arith.constant 5.000000e-01 : f32
    %38 = vector.broadcast %cst_16 : f32 to vector<4x256xf32>
    %39 = arith.mulf %38, %1 : vector<4x256xf32>
    %cst_17 = arith.constant 1.000000e+00 : f32
    %40 = vector.broadcast %cst_17 : f32 to vector<4x256xf32>
    %41 = arith.addf %40, %37 : vector<4x256xf32>
    %42 = arith.mulf %39, %41 : vector<4x256xf32>
    %c0_18 = arith.constant 0 : index
    %c0_19 = arith.constant 0 : index
    %43 = vector.load %arg6[%c0_18, %c0_19] : memref<72x256xf32, #tpu.memory_space<vmem>>, vector<4x256xf32>
    tpu.vector_store %arg6[%c0_18, %c0_19], %42 {strides = array<i32>} : memref<72x256xf32, #tpu.memory_space<vmem>>, vector<4x256xf32>,
    %cst_20 = arith.constant -2.200000e+00 : f32
    %44 = vector.broadcast %cst_20 : f32 to vector<4x256xf32>
    %45 = arith.cmpf oge, %1, %44 : vector<4x256xf32>
    %cst_21 = arith.constant 1.000000e+00 : f32
    %cst_22 = arith.constant 0.000000e+00 : f32
    %46 = vector.broadcast %cst_21 : f32 to vector<4x256xf32>
    %47 = vector.broadcast %cst_22 : f32 to vector<4x256xf32>
    %48 = arith.select %45, %46, %47 : vector<4x256xi1>, vector<4x256xf32>
    %cst_23 = arith.constant -1.800000e+00 : f32
    %49 = vector.broadcast %cst_23 : f32 to vector<4x256xf32>
    %50 = arith.cmpf oge, %1, %49 : vector<4x256xf32>
    %cst_24 = arith.constant 1.000000e+00 : f32
    %cst_25 = arith.constant 0.000000e+00 : f32
    %51 = vector.broadcast %cst_24 : f32 to vector<4x256xf32>
    %52 = vector.broadcast %cst_25 : f32 to vector<4x256xf32>
    %53 = arith.select %50, %51, %52 : vector<4x256xi1>, vector<4x256xf32>
    %54 = arith.subf %48, %53 : vector<4x256xf32>
    %cst_26 = arith.constant -1.400000e+00 : f32
    %55 = vector.broadcast %cst_26 : f32 to vector<4x256xf32>
    %56 = arith.cmpf oge, %1, %55 : vector<4x256xf32>
    %cst_27 = arith.constant 1.000000e+00 : f32
    %cst_28 = arith.constant 0.000000e+00 : f32
    %57 = vector.broadcast %cst_27 : f32 to vector<4x256xf32>
    %58 = vector.broadcast %cst_28 : f32 to vector<4x256xf32>
    %59 = arith.select %56, %57, %58 : vector<4x256xi1>, vector<4x256xf32>
    %60 = arith.subf %53, %59 : vector<4x256xf32>
    %cst_29 = arith.constant -1.000000e+00 : f32
    %61 = vector.broadcast %cst_29 : f32 to vector<4x256xf32>
    %62 = arith.cmpf oge, %1, %61 : vector<4x256xf32>
    %cst_30 = arith.constant 1.000000e+00 : f32
    %cst_31 = arith.constant 0.000000e+00 : f32
    %63 = vector.broadcast %cst_30 : f32 to vector<4x256xf32>
    %64 = vector.broadcast %cst_31 : f32 to vector<4x256xf32>
    %65 = arith.select %62, %63, %64 : vector<4x256xi1>, vector<4x256xf32>
    %66 = arith.subf %59, %65 : vector<4x256xf32>
    %cst_32 = arith.constant -6.000000e-01 : f32
    %67 = vector.broadcast %cst_32 : f32 to vector<4x256xf32>
    %68 = arith.cmpf oge, %1, %67 : vector<4x256xf32>
    %cst_33 = arith.constant 1.000000e+00 : f32
    %cst_34 = arith.constant 0.000000e+00 : f32
    %69 = vector.broadcast %cst_33 : f32 to vector<4x256xf32>
    %70 = vector.broadcast %cst_34 : f32 to vector<4x256xf32>
    %71 = arith.select %68, %69, %70 : vector<4x256xi1>, vector<4x256xf32>
    %72 = arith.subf %65, %71 : vector<4x256xf32>
    %cst_35 = arith.constant -2.000000e-01 : f32
    %73 = vector.broadcast %cst_35 : f32 to vector<4x256xf32>
    %74 = arith.cmpf oge, %1, %73 : vector<4x256xf32>
    %cst_36 = arith.constant 1.000000e+00 : f32
    %cst_37 = arith.constant 0.000000e+00 : f32
    %75 = vector.broadcast %cst_36 : f32 to vector<4x256xf32>
    %76 = vector.broadcast %cst_37 : f32 to vector<4x256xf32>
    %77 = arith.select %74, %75, %76 : vector<4x256xi1>, vector<4x256xf32>
    %78 = arith.subf %71, %77 : vector<4x256xf32>
    %cst_38 = arith.constant 2.000000e-01 : f32
    %79 = vector.broadcast %cst_38 : f32 to vector<4x256xf32>
    %80 = arith.cmpf oge, %1, %79 : vector<4x256xf32>
    %cst_39 = arith.constant 1.000000e+00 : f32
    %cst_40 = arith.constant 0.000000e+00 : f32
    %81 = vector.broadcast %cst_39 : f32 to vector<4x256xf32>
    %82 = vector.broadcast %cst_40 : f32 to vector<4x256xf32>
    %83 = arith.select %80, %81, %82 : vector<4x256xi1>, vector<4x256xf32>
    %84 = arith.subf %77, %83 : vector<4x256xf32>
    %cst_41 = arith.constant 6.000000e-01 : f32
    %85 = vector.broadcast %cst_41 : f32 to vector<4x256xf32>
    %86 = arith.cmpf oge, %1, %85 : vector<4x256xf32>
    %cst_42 = arith.constant 1.000000e+00 : f32
    %cst_43 = arith.constant 0.000000e+00 : f32
    %87 = vector.broadcast %cst_42 : f32 to vector<4x256xf32>
    %88 = vector.broadcast %cst_43 : f32 to vector<4x256xf32>
    %89 = arith.select %86, %87, %88 : vector<4x256xi1>, vector<4x256xf32>
    %90 = arith.subf %83, %89 : vector<4x256xf32>
    %cst_44 = arith.constant 1.000000e+00 : f32
    %91 = vector.broadcast %cst_44 : f32 to vector<4x256xf32>
    %92 = arith.cmpf oge, %1, %91 : vector<4x256xf32>
    %cst_45 = arith.constant 1.000000e+00 : f32
    %cst_46 = arith.constant 0.000000e+00 : f32
    %93 = vector.broadcast %cst_45 : f32 to vector<4x256xf32>
    %94 = vector.broadcast %cst_46 : f32 to vector<4x256xf32>
    %95 = arith.select %92, %93, %94 : vector<4x256xi1>, vector<4x256xf32>
    %96 = arith.subf %89, %95 : vector<4x256xf32>
    %cst_47 = arith.constant 1.400000e+00 : f32
    %97 = vector.broadcast %cst_47 : f32 to vector<4x256xf32>
    %98 = arith.cmpf oge, %1, %97 : vector<4x256xf32>
    %cst_48 = arith.constant 1.000000e+00 : f32
    %cst_49 = arith.constant 0.000000e+00 : f32
    %99 = vector.broadcast %cst_48 : f32 to vector<4x256xf32>
    %100 = vector.broadcast %cst_49 : f32 to vector<4x256xf32>
    %101 = arith.select %98, %99, %100 : vector<4x256xi1>, vector<4x256xf32>
    %102 = arith.subf %95, %101 : vector<4x256xf32>
    %cst_50 = arith.constant 1.800000e+00 : f32
    %103 = vector.broadcast %cst_50 : f32 to vector<4x256xf32>
    %104 = arith.cmpf oge, %1, %103 : vector<4x256xf32>
    %cst_51 = arith.constant 1.000000e+00 : f32
    %cst_52 = arith.constant 0.000000e+00 : f32
    %105 = vector.broadcast %cst_51 : f32 to vector<4x256xf32>
    %106 = vector.broadcast %cst_52 : f32 to vector<4x256xf32>
    %107 = arith.select %104, %105, %106 : vector<4x256xi1>, vector<4x256xf32>
    %108 = arith.subf %101, %107 : vector<4x256xf32>
    %cst_53 = arith.constant 2.200000e+00 : f32
    %109 = vector.broadcast %cst_53 : f32 to vector<4x256xf32>
    %110 = arith.cmpf oge, %1, %109 : vector<4x256xf32>
    %cst_54 = arith.constant 1.000000e+00 : f32
    %cst_55 = arith.constant 0.000000e+00 : f32
    %111 = vector.broadcast %cst_54 : f32 to vector<4x256xf32>
    %112 = vector.broadcast %cst_55 : f32 to vector<4x256xf32>
    %113 = arith.select %110, %111, %112 : vector<4x256xi1>, vector<4x256xf32>
    %114 = arith.subf %107, %113 : vector<4x256xf32>
    %cst_56 = arith.constant -2.200000e+00 : f32
    %115 = vector.broadcast %cst_56 : f32 to vector<4x256xf32>
    %116 = arith.subf %1, %115 : vector<4x256xf32>
    %cst_57 = arith.constant 2.500000e+00 : f32
    %117 = vector.broadcast %cst_57 : f32 to vector<4x256xf32>
    %118 = arith.mulf %116, %117 : vector<4x256xf32>
    %119 = arith.mulf %118, %54 : vector<4x256xf32>
    %cst_58 = arith.constant -1.800000e+00 : f32
    %120 = vector.broadcast %cst_58 : f32 to vector<4x256xf32>
    %121 = arith.subf %1, %120 : vector<4x256xf32>
    %cst_59 = arith.constant 2.500000e+00 : f32
    %122 = vector.broadcast %cst_59 : f32 to vector<4x256xf32>
    %123 = arith.mulf %121, %122 : vector<4x256xf32>
    %124 = arith.mulf %123, %60 : vector<4x256xf32>
    %125 = arith.subf %60, %124 : vector<4x256xf32>
    %126 = arith.addf %119, %125 : vector<4x256xf32>
    %cst_60 = arith.constant -1.400000e+00 : f32
    %127 = vector.broadcast %cst_60 : f32 to vector<4x256xf32>
    %128 = arith.subf %1, %127 : vector<4x256xf32>
    %cst_61 = arith.constant 2.500000e+00 : f32
    %129 = vector.broadcast %cst_61 : f32 to vector<4x256xf32>
    %130 = arith.mulf %128, %129 : vector<4x256xf32>
    %131 = arith.mulf %130, %66 : vector<4x256xf32>
    %132 = arith.subf %66, %131 : vector<4x256xf32>
    %133 = arith.addf %124, %132 : vector<4x256xf32>
    %cst_62 = arith.constant -1.000000e+00 : f32
    %134 = vector.broadcast %cst_62 : f32 to vector<4x256xf32>
    %135 = arith.subf %1, %134 : vector<4x256xf32>
    %cst_63 = arith.constant 2.500000e+00 : f32
    %136 = vector.broadcast %cst_63 : f32 to vector<4x256xf32>
    %137 = arith.mulf %135, %136 : vector<4x256xf32>
    %138 = arith.mulf %137, %72 : vector<4x256xf32>
    %139 = arith.subf %72, %138 : vector<4x256xf32>
    %140 = arith.addf %131, %139 : vector<4x256xf32>
    %cst_64 = arith.constant -6.000000e-01 : f32
    %141 = vector.broadcast %cst_64 : f32 to vector<4x256xf32>
    %142 = arith.subf %1, %141 : vector<4x256xf32>
    %cst_65 = arith.constant 2.500000e+00 : f32
    %143 = vector.broadcast %cst_65 : f32 to vector<4x256xf32>
    %144 = arith.mulf %142, %143 : vector<4x256xf32>
    %145 = arith.mulf %144, %78 : vector<4x256xf32>
    %146 = arith.subf %78, %145 : vector<4x256xf32>
    %147 = arith.addf %138, %146 : vector<4x256xf32>
    %cst_66 = arith.constant -2.000000e-01 : f32
    %148 = vector.broadcast %cst_66 : f32 to vector<4x256xf32>
    %149 = arith.subf %1, %148 : vector<4x256xf32>
    %cst_67 = arith.constant 2.500000e+00 : f32
    %150 = vector.broadcast %cst_67 : f32 to vector<4x256xf32>
    %151 = arith.mulf %149, %150 : vector<4x256xf32>
    %152 = arith.mulf %151, %84 : vector<4x256xf32>
    %153 = arith.subf %84, %152 : vector<4x256xf32>
    %154 = arith.addf %145, %153 : vector<4x256xf32>
    %cst_68 = arith.constant 2.000000e-01 : f32
    %155 = vector.broadcast %cst_68 : f32 to vector<4x256xf32>
    %156 = arith.subf %1, %155 : vector<4x256xf32>
    %cst_69 = arith.constant 2.500000e+00 : f32
    %157 = vector.broadcast %cst_69 : f32 to vector<4x256xf32>
    %158 = arith.mulf %156, %157 : vector<4x256xf32>
    %159 = arith.mulf %158, %90 : vector<4x256xf32>
    %160 = arith.subf %90, %159 : vector<4x256xf32>
    %161 = arith.addf %152, %160 : vector<4x256xf32>
    %cst_70 = arith.constant 6.000000e-01 : f32
    %162 = vector.broadcast %cst_70 : f32 to vector<4x256xf32>
    %163 = arith.subf %1, %162 : vector<4x256xf32>
    %cst_71 = arith.constant 2.500000e+00 : f32
    %164 = vector.broadcast %cst_71 : f32 to vector<4x256xf32>
    %165 = arith.mulf %163, %164 : vector<4x256xf32>
    %166 = arith.mulf %165, %96 : vector<4x256xf32>
    %167 = arith.subf %96, %166 : vector<4x256xf32>
    %168 = arith.addf %159, %167 : vector<4x256xf32>
    %cst_72 = arith.constant 1.000000e+00 : f32
    %169 = vector.broadcast %cst_72 : f32 to vector<4x256xf32>
    %170 = arith.subf %1, %169 : vector<4x256xf32>
    %cst_73 = arith.constant 2.500000e+00 : f32
    %171 = vector.broadcast %cst_73 : f32 to vector<4x256xf32>
    %172 = arith.mulf %170, %171 : vector<4x256xf32>
    %173 = arith.mulf %172, %102 : vector<4x256xf32>
    %174 = arith.subf %102, %173 : vector<4x256xf32>
    %175 = arith.addf %166, %174 : vector<4x256xf32>
    %cst_74 = arith.constant 1.400000e+00 : f32
    %176 = vector.broadcast %cst_74 : f32 to vector<4x256xf32>
    %177 = arith.subf %1, %176 : vector<4x256xf32>
    %cst_75 = arith.constant 2.500000e+00 : f32
    %178 = vector.broadcast %cst_75 : f32 to vector<4x256xf32>
    %179 = arith.mulf %177, %178 : vector<4x256xf32>
    %180 = arith.mulf %179, %108 : vector<4x256xf32>
    %181 = arith.subf %108, %180 : vector<4x256xf32>
    %182 = arith.addf %173, %181 : vector<4x256xf32>
    %cst_76 = arith.constant 1.800000e+00 : f32
    %183 = vector.broadcast %cst_76 : f32 to vector<4x256xf32>
    %184 = arith.subf %1, %183 : vector<4x256xf32>
    %cst_77 = arith.constant 2.500000e+00 : f32
    %185 = vector.broadcast %cst_77 : f32 to vector<4x256xf32>
    %186 = arith.mulf %184, %185 : vector<4x256xf32>
    %187 = arith.mulf %186, %114 : vector<4x256xf32>
    %188 = arith.subf %114, %187 : vector<4x256xf32>
    %189 = arith.addf %180, %188 : vector<4x256xf32>
    %cst_78 = arith.constant -2.200000e+00 : f32
    %190 = vector.broadcast %cst_78 : f32 to vector<4x256xf32>
    %191 = arith.subf %1, %190 : vector<4x256xf32>
    %cst_79 = arith.constant 1.250000e+00 : f32
    %192 = vector.broadcast %cst_79 : f32 to vector<4x256xf32>
    %193 = arith.mulf %191, %192 : vector<4x256xf32>
    %194 = arith.mulf %193, %126 : vector<4x256xf32>
    %cst_80 = arith.constant -1.800000e+00 : f32
    %195 = vector.broadcast %cst_80 : f32 to vector<4x256xf32>
    %196 = arith.subf %1, %195 : vector<4x256xf32>
    %cst_81 = arith.constant 1.250000e+00 : f32
    %197 = vector.broadcast %cst_81 : f32 to vector<4x256xf32>
    %198 = arith.mulf %196, %197 : vector<4x256xf32>
    %199 = arith.mulf %198, %133 : vector<4x256xf32>
    %200 = arith.subf %133, %199 : vector<4x256xf32>
    %201 = arith.addf %194, %200 : vector<4x256xf32>
    %cst_82 = arith.constant -1.400000e+00 : f32
    %202 = vector.broadcast %cst_82 : f32 to vector<4x256xf32>
    %203 = arith.subf %1, %202 : vector<4x256xf32>
    %cst_83 = arith.constant 1.250000e+00 : f32
    %204 = vector.broadcast %cst_83 : f32 to vector<4x256xf32>
    %205 = arith.mulf %203, %204 : vector<4x256xf32>
    %206 = arith.mulf %205, %140 : vector<4x256xf32>
    %207 = arith.subf %140, %206 : vector<4x256xf32>
    %208 = arith.addf %199, %207 : vector<4x256xf32>
    %cst_84 = arith.constant -1.000000e+00 : f32
    %209 = vector.broadcast %cst_84 : f32 to vector<4x256xf32>
    %210 = arith.subf %1, %209 : vector<4x256xf32>
    %cst_85 = arith.constant 1.250000e+00 : f32
    %211 = vector.broadcast %cst_85 : f32 to vector<4x256xf32>
    %212 = arith.mulf %210, %211 : vector<4x256xf32>
    %213 = arith.mulf %212, %147 : vector<4x256xf32>
    %214 = arith.subf %147, %213 : vector<4x256xf32>
    %215 = arith.addf %206, %214 : vector<4x256xf32>
    %cst_86 = arith.constant -6.000000e-01 : f32
    %216 = vector.broadcast %cst_86 : f32 to vector<4x256xf32>
    %217 = arith.subf %1, %216 : vector<4x256xf32>
    %cst_87 = arith.constant 1.250000e+00 : f32
    %218 = vector.broadcast %cst_87 : f32 to vector<4x256xf32>
    %219 = arith.mulf %217, %218 : vector<4x256xf32>
    %220 = arith.mulf %219, %154 : vector<4x256xf32>
    %221 = arith.subf %154, %220 : vector<4x256xf32>
    %222 = arith.addf %213, %221 : vector<4x256xf32>
    %cst_88 = arith.constant -2.000000e-01 : f32
    %223 = vector.broadcast %cst_88 : f32 to vector<4x256xf32>
    %224 = arith.subf %1, %223 : vector<4x256xf32>
    %cst_89 = arith.constant 1.250000e+00 : f32
    %225 = vector.broadcast %cst_89 : f32 to vector<4x256xf32>
    %226 = arith.mulf %224, %225 : vector<4x256xf32>
    %227 = arith.mulf %226, %161 : vector<4x256xf32>
    %228 = arith.subf %161, %227 : vector<4x256xf32>
    %229 = arith.addf %220, %228 : vector<4x256xf32>
    %cst_90 = arith.constant 2.000000e-01 : f32
    %230 = vector.broadcast %cst_90 : f32 to vector<4x256xf32>
    %231 = arith.subf %1, %230 : vector<4x256xf32>
    %cst_91 = arith.constant 1.250000e+00 : f32
    %232 = vector.broadcast %cst_91 : f32 to vector<4x256xf32>
    %233 = arith.mulf %231, %232 : vector<4x256xf32>
    %234 = arith.mulf %233, %168 : vector<4x256xf32>
    %235 = arith.subf %168, %234 : vector<4x256xf32>
    %236 = arith.addf %227, %235 : vector<4x256xf32>
    %cst_92 = arith.constant 6.000000e-01 : f32
    %237 = vector.broadcast %cst_92 : f32 to vector<4x256xf32>
    %238 = arith.subf %1, %237 : vector<4x256xf32>
    %cst_93 = arith.constant 1.250000e+00 : f32
    %239 = vector.broadcast %cst_93 : f32 to vector<4x256xf32>
    %240 = arith.mulf %238, %239 : vector<4x256xf32>
    %241 = arith.mulf %240, %175 : vector<4x256xf32>
    %242 = arith.subf %175, %241 : vector<4x256xf32>
    %243 = arith.addf %234, %242 : vector<4x256xf32>
    %cst_94 = arith.constant 1.000000e+00 : f32
    %244 = vector.broadcast %cst_94 : f32 to vector<4x256xf32>
    %245 = arith.subf %1, %244 : vector<4x256xf32>
    %cst_95 = arith.constant 1.250000e+00 : f32
    %246 = vector.broadcast %cst_95 : f32 to vector<4x256xf32>
    %247 = arith.mulf %245, %246 : vector<4x256xf32>
    %248 = arith.mulf %247, %182 : vector<4x256xf32>
    %249 = arith.subf %182, %248 : vector<4x256xf32>
    %250 = arith.addf %241, %249 : vector<4x256xf32>
    %cst_96 = arith.constant 1.400000e+00 : f32
    %251 = vector.broadcast %cst_96 : f32 to vector<4x256xf32>
    %252 = arith.subf %1, %251 : vector<4x256xf32>
    %cst_97 = arith.constant 1.250000e+00 : f32
    %253 = vector.broadcast %cst_97 : f32 to vector<4x256xf32>
    %254 = arith.mulf %252, %253 : vector<4x256xf32>
    %255 = arith.mulf %254, %189 : vector<4x256xf32>
    %256 = arith.subf %189, %255 : vector<4x256xf32>
    %257 = arith.addf %248, %256 : vector<4x256xf32>
    %cst_98 = arith.constant -2.200000e+00 : f32
    %258 = vector.broadcast %cst_98 : f32 to vector<4x256xf32>
    %259 = arith.subf %1, %258 : vector<4x256xf32>
    %cst_99 = arith.constant 0.833333313 : f32
    %260 = vector.broadcast %cst_99 : f32 to vector<4x256xf32>
    %261 = arith.mulf %259, %260 : vector<4x256xf32>
    %262 = arith.mulf %261, %201 : vector<4x256xf32>
    %cst_100 = arith.constant -1.800000e+00 : f32
    %263 = vector.broadcast %cst_100 : f32 to vector<4x256xf32>
    %264 = arith.subf %1, %263 : vector<4x256xf32>
    %cst_101 = arith.constant 0.833333313 : f32
    %265 = vector.broadcast %cst_101 : f32 to vector<4x256xf32>
    %266 = arith.mulf %264, %265 : vector<4x256xf32>
    %267 = arith.mulf %266, %208 : vector<4x256xf32>
    %268 = arith.subf %208, %267 : vector<4x256xf32>
    %269 = arith.addf %262, %268 : vector<4x256xf32>
    %cst_102 = arith.constant -1.400000e+00 : f32
    %270 = vector.broadcast %cst_102 : f32 to vector<4x256xf32>
    %271 = arith.subf %1, %270 : vector<4x256xf32>
    %cst_103 = arith.constant 0.833333313 : f32
    %272 = vector.broadcast %cst_103 : f32 to vector<4x256xf32>
    %273 = arith.mulf %271, %272 : vector<4x256xf32>
    %274 = arith.mulf %273, %215 : vector<4x256xf32>
    %275 = arith.subf %215, %274 : vector<4x256xf32>
    %276 = arith.addf %267, %275 : vector<4x256xf32>
    %cst_104 = arith.constant -1.000000e+00 : f32
    %277 = vector.broadcast %cst_104 : f32 to vector<4x256xf32>
    %278 = arith.subf %1, %277 : vector<4x256xf32>
    %cst_105 = arith.constant 0.833333313 : f32
    %279 = vector.broadcast %cst_105 : f32 to vector<4x256xf32>
    %280 = arith.mulf %278, %279 : vector<4x256xf32>
    %281 = arith.mulf %280, %222 : vector<4x256xf32>
    %282 = arith.subf %222, %281 : vector<4x256xf32>
    %283 = arith.addf %274, %282 : vector<4x256xf32>
    %cst_106 = arith.constant -6.000000e-01 : f32
    %284 = vector.broadcast %cst_106 : f32 to vector<4x256xf32>
    %285 = arith.subf %1, %284 : vector<4x256xf32>
    %cst_107 = arith.constant 0.833333313 : f32
    %286 = vector.broadcast %cst_107 : f32 to vector<4x256xf32>
    %287 = arith.mulf %285, %286 : vector<4x256xf32>
    %288 = arith.mulf %287, %229 : vector<4x256xf32>
    %289 = arith.subf %229, %288 : vector<4x256xf32>
    %290 = arith.addf %281, %289 : vector<4x256xf32>
    %cst_108 = arith.constant -2.000000e-01 : f32
    %291 = vector.broadcast %cst_108 : f32 to vector<4x256xf32>
    %292 = arith.subf %1, %291 : vector<4x256xf32>
    %cst_109 = arith.constant 0.833333313 : f32
    %293 = vector.broadcast %cst_109 : f32 to vector<4x256xf32>
    %294 = arith.mulf %292, %293 : vector<4x256xf32>
    %295 = arith.mulf %294, %236 : vector<4x256xf32>
    %296 = arith.subf %236, %295 : vector<4x256xf32>
    %297 = arith.addf %288, %296 : vector<4x256xf32>
    %cst_110 = arith.constant 2.000000e-01 : f32
    %298 = vector.broadcast %cst_110 : f32 to vector<4x256xf32>
    %299 = arith.subf %1, %298 : vector<4x256xf32>
    %cst_111 = arith.constant 0.833333313 : f32
    %300 = vector.broadcast %cst_111 : f32 to vector<4x256xf32>
    %301 = arith.mulf %299, %300 : vector<4x256xf32>
    %302 = arith.mulf %301, %243 : vector<4x256xf32>
    %303 = arith.subf %243, %302 : vector<4x256xf32>
    %304 = arith.addf %295, %303 : vector<4x256xf32>
    %cst_112 = arith.constant 6.000000e-01 : f32
    %305 = vector.broadcast %cst_112 : f32 to vector<4x256xf32>
    %306 = arith.subf %1, %305 : vector<4x256xf32>
    %cst_113 = arith.constant 0.833333313 : f32
    %307 = vector.broadcast %cst_113 : f32 to vector<4x256xf32>
    %308 = arith.mulf %306, %307 : vector<4x256xf32>
    %309 = arith.mulf %308, %250 : vector<4x256xf32>
    %310 = arith.subf %250, %309 : vector<4x256xf32>
    %311 = arith.addf %302, %310 : vector<4x256xf32>
    %cst_114 = arith.constant 1.000000e+00 : f32
    %312 = vector.broadcast %cst_114 : f32 to vector<4x256xf32>
    %313 = arith.subf %1, %312 : vector<4x256xf32>
    %cst_115 = arith.constant 0.833333313 : f32
    %314 = vector.broadcast %cst_115 : f32 to vector<4x256xf32>
    %315 = arith.mulf %313, %314 : vector<4x256xf32>
    %316 = arith.mulf %315, %257 : vector<4x256xf32>
    %317 = arith.subf %257, %316 : vector<4x256xf32>
    %318 = arith.addf %309, %317 : vector<4x256xf32>
    %c8 = arith.constant 8 : index
    %c0_116 = arith.constant 0 : index
    %319 = vector.load %arg6[%c8, %c0_116] : memref<72x256xf32, #tpu.memory_space<vmem>>, vector<4x256xf32>
    tpu.vector_store %arg6[%c8, %c0_116], %269 {strides = array<i32>} : memref<72x256xf32, #tpu.memory_space<vmem>>, vector<4x256xf32>,
    %c16 = arith.constant 16 : index
    %c0_117 = arith.constant 0 : index
    %320 = vector.load %arg6[%c16, %c0_117] : memref<72x256xf32, #tpu.memory_space<vmem>>, vector<4x256xf32>
    tpu.vector_store %arg6[%c16, %c0_117], %276 {strides = array<i32>} : memref<72x256xf32, #tpu.memory_space<vmem>>, vector<4x256xf32>,
    %c24 = arith.constant 24 : index
    %c0_118 = arith.constant 0 : index
    %321 = vector.load %arg6[%c24, %c0_118] : memref<72x256xf32, #tpu.memory_space<vmem>>, vector<4x256xf32>
    tpu.vector_store %arg6[%c24, %c0_118], %283 {strides = array<i32>} : memref<72x256xf32, #tpu.memory_space<vmem>>, vector<4x256xf32>,
    %c32 = arith.constant 32 : index
    %c0_119 = arith.constant 0 : index
    %322 = vector.load %arg6[%c32, %c0_119] : memref<72x256xf32, #tpu.memory_space<vmem>>, vector<4x256xf32>
    tpu.vector_store %arg6[%c32, %c0_119], %290 {strides = array<i32>} : memref<72x256xf32, #tpu.memory_space<vmem>>, vector<4x256xf32>,
    %c40 = arith.constant 40 : index
    %c0_120 = arith.constant 0 : index
    %323 = vector.load %arg6[%c40, %c0_120] : memref<72x256xf32, #tpu.memory_space<vmem>>, vector<4x256xf32>
    tpu.vector_store %arg6[%c40, %c0_120], %297 {strides = array<i32>} : memref<72x256xf32, #tpu.memory_space<vmem>>, vector<4x256xf32>,
    %c48 = arith.constant 48 : index
    %c0_121 = arith.constant 0 : index
    %324 = vector.load %arg6[%c48, %c0_121] : memref<72x256xf32, #tpu.memory_space<vmem>>, vector<4x256xf32>
    tpu.vector_store %arg6[%c48, %c0_121], %304 {strides = array<i32>} : memref<72x256xf32, #tpu.memory_space<vmem>>, vector<4x256xf32>,
    %c56 = arith.constant 56 : index
    %c0_122 = arith.constant 0 : index
    %325 = vector.load %arg6[%c56, %c0_122] : memref<72x256xf32, #tpu.memory_space<vmem>>, vector<4x256xf32>
    tpu.vector_store %arg6[%c56, %c0_122], %311 {strides = array<i32>} : memref<72x256xf32, #tpu.memory_space<vmem>>, vector<4x256xf32>,
    %c64 = arith.constant 64 : index
    %c0_123 = arith.constant 0 : index
    %326 = vector.load %arg6[%c64, %c0_123] : memref<72x256xf32, #tpu.memory_space<vmem>>, vector<4x256xf32>
    tpu.vector_store %arg6[%c64, %c0_123], %318 {strides = array<i32>} : memref<72x256xf32, #tpu.memory_space<vmem>>, vector<4x256xf32>,
    %c0_124 = arith.constant 0 : index
    %c0_125 = arith.constant 0 : index
    %327 = vector.load %arg6[%c0_124, %c0_125] : memref<72x256xf32, #tpu.memory_space<vmem>>, vector<72x256xf32>
    %c0_126 = arith.constant 0 : index
    %c0_127 = arith.constant 0 : index
    %c0_128 = arith.constant 0 : index
    %328 = vector.load %arg3[%c0_126, %c0_127, %c0_128] : memref<9x1x256xf32, #tpu.memory_space<vmem>>, vector<1x1x256xf32>
    %329 = vector.shape_cast %328 : vector<1x1x256xf32> to vector<1x256xf32>
    %330 = vector.extract_strided_slice %327 {offsets = [0, 239], sizes = [72, 17], strides = [1, 1]} : vector<72x256xf32> to vector<72x17xf32>
    %331 = vector.extract_strided_slice %327 {offsets = [0, 0], sizes = [72, 239], strides = [1, 1]} : vector<72x256xf32> to vector<72x239xf32>
    %332 = tpu.concatenate %330, %331 in 1 : vector<72x17xf32>, vector<72x239xf32> -> vector<72x256xf32>
    %333 = vector.broadcast %329 : vector<1x256xf32> to vector<72x256xf32>
    %334 = arith.mulf %332, %333 : vector<72x256xf32>
    %c0_129 = arith.constant 0 : index
    %c0_130 = arith.constant 0 : index
    %335 = vector.load %arg7[%c0_129, %c0_130] : memref<648x256xf32, #tpu.memory_space<vmem>>, vector<72x256xf32>
    tpu.vector_store %arg7[%c0_129, %c0_130], %334 {strides = array<i32>} : memref<648x256xf32, #tpu.memory_space<vmem>>, vector<72x256xf32>,
    %c1 = arith.constant 1 : index
    %c0_131 = arith.constant 0 : index
    %c0_132 = arith.constant 0 : index
    %336 = vector.load %arg3[%c1, %c0_131, %c0_132] : memref<9x1x256xf32, #tpu.memory_space<vmem>>, vector<1x1x256xf32>
    %337 = vector.shape_cast %336 : vector<1x1x256xf32> to vector<1x256xf32>
    %338 = vector.extract_strided_slice %327 {offsets = [0, 240], sizes = [72, 16], strides = [1, 1]} : vector<72x256xf32> to vector<72x16xf32>
    %339 = vector.extract_strided_slice %327 {offsets = [0, 0], sizes = [72, 240], strides = [1, 1]} : vector<72x256xf32> to vector<72x240xf32>
    %340 = tpu.concatenate %338, %339 in 1 : vector<72x16xf32>, vector<72x240xf32> -> vector<72x256xf32>
    %341 = vector.broadcast %337 : vector<1x256xf32> to vector<72x256xf32>
    %342 = arith.mulf %340, %341 : vector<72x256xf32>
    %c72 = arith.constant 72 : index
    %c0_133 = arith.constant 0 : index
    %343 = vector.load %arg7[%c72, %c0_133] : memref<648x256xf32, #tpu.memory_space<vmem>>, vector<72x256xf32>
    tpu.vector_store %arg7[%c72, %c0_133], %342 {strides = array<i32>} : memref<648x256xf32, #tpu.memory_space<vmem>>, vector<72x256xf32>,
    %c2 = arith.constant 2 : index
    %c0_134 = arith.constant 0 : index
    %c0_135 = arith.constant 0 : index
    %344 = vector.load %arg3[%c2, %c0_134, %c0_135] : memref<9x1x256xf32, #tpu.memory_space<vmem>>, vector<1x1x256xf32>
    %345 = vector.shape_cast %344 : vector<1x1x256xf32> to vector<1x256xf32>
    %346 = vector.extract_strided_slice %327 {offsets = [0, 241], sizes = [72, 15], strides = [1, 1]} : vector<72x256xf32> to vector<72x15xf32>
    %347 = vector.extract_strided_slice %327 {offsets = [0, 0], sizes = [72, 241], strides = [1, 1]} : vector<72x256xf32> to vector<72x241xf32>
    %348 = tpu.concatenate %346, %347 in 1 : vector<72x15xf32>, vector<72x241xf32> -> vector<72x256xf32>
    %349 = vector.broadcast %345 : vector<1x256xf32> to vector<72x256xf32>
    %350 = arith.mulf %348, %349 : vector<72x256xf32>
    %c144 = arith.constant 144 : index
    %c0_136 = arith.constant 0 : index
    %351 = vector.load %arg7[%c144, %c0_136] : memref<648x256xf32, #tpu.memory_space<vmem>>, vector<72x256xf32>
    tpu.vector_store %arg7[%c144, %c0_136], %350 {strides = array<i32>} : memref<648x256xf32, #tpu.memory_space<vmem>>, vector<72x256xf32>,
    %c3 = arith.constant 3 : index
    %c0_137 = arith.constant 0 : index
    %c0_138 = arith.constant 0 : index
    %352 = vector.load %arg3[%c3, %c0_137, %c0_138] : memref<9x1x256xf32, #tpu.memory_space<vmem>>, vector<1x1x256xf32>
    %353 = vector.shape_cast %352 : vector<1x1x256xf32> to vector<1x256xf32>
    %354 = vector.extract_strided_slice %327 {offsets = [0, 255], sizes = [72, 1], strides = [1, 1]} : vector<72x256xf32> to vector<72x1xf32>
    %355 = vector.extract_strided_slice %327 {offsets = [0, 0], sizes = [72, 255], strides = [1, 1]} : vector<72x256xf32> to vector<72x255xf32>
    %356 = tpu.concatenate %354, %355 in 1 : vector<72x1xf32>, vector<72x255xf32> -> vector<72x256xf32>
    %357 = vector.broadcast %353 : vector<1x256xf32> to vector<72x256xf32>
    %358 = arith.mulf %356, %357 : vector<72x256xf32>
    %c216 = arith.constant 216 : index
    %c0_139 = arith.constant 0 : index
    %359 = vector.load %arg7[%c216, %c0_139] : memref<648x256xf32, #tpu.memory_space<vmem>>, vector<72x256xf32>
    tpu.vector_store %arg7[%c216, %c0_139], %358 {strides = array<i32>} : memref<648x256xf32, #tpu.memory_space<vmem>>, vector<72x256xf32>,
    %c4 = arith.constant 4 : index
    %c0_140 = arith.constant 0 : index
    %c0_141 = arith.constant 0 : index
    %360 = vector.load %arg3[%c4, %c0_140, %c0_141] : memref<9x1x256xf32, #tpu.memory_space<vmem>>, vector<1x1x256xf32>
    %361 = vector.shape_cast %360 : vector<1x1x256xf32> to vector<1x256xf32>
    %362 = vector.broadcast %361 : vector<1x256xf32> to vector<72x256xf32>
    %363 = arith.mulf %327, %362 : vector<72x256xf32>
    %c288 = arith.constant 288 : index
    %c0_142 = arith.constant 0 : index
    %364 = vector.load %arg7[%c288, %c0_142] : memref<648x256xf32, #tpu.memory_space<vmem>>, vector<72x256xf32>
    tpu.vector_store %arg7[%c288, %c0_142], %363 {strides = array<i32>} : memref<648x256xf32, #tpu.memory_space<vmem>>, vector<72x256xf32>,
    %c5 = arith.constant 5 : index
    %c0_143 = arith.constant 0 : index
    %c0_144 = arith.constant 0 : index
    %365 = vector.load %arg3[%c5, %c0_143, %c0_144] : memref<9x1x256xf32, #tpu.memory_space<vmem>>, vector<1x1x256xf32>
    %366 = vector.shape_cast %365 : vector<1x1x256xf32> to vector<1x256xf32>
    %367 = vector.extract_strided_slice %327 {offsets = [0, 1], sizes = [72, 255], strides = [1, 1]} : vector<72x256xf32> to vector<72x255xf32>
    %368 = vector.extract_strided_slice %327 {offsets = [0, 0], sizes = [72, 1], strides = [1, 1]} : vector<72x256xf32> to vector<72x1xf32>
    %369 = tpu.concatenate %367, %368 in 1 : vector<72x255xf32>, vector<72x1xf32> -> vector<72x256xf32>
    %370 = vector.broadcast %366 : vector<1x256xf32> to vector<72x256xf32>
    %371 = arith.mulf %369, %370 : vector<72x256xf32>
    %c360 = arith.constant 360 : index
    %c0_145 = arith.constant 0 : index
    %372 = vector.load %arg7[%c360, %c0_145] : memref<648x256xf32, #tpu.memory_space<vmem>>, vector<72x256xf32>
    tpu.vector_store %arg7[%c360, %c0_145], %371 {strides = array<i32>} : memref<648x256xf32, #tpu.memory_space<vmem>>, vector<72x256xf32>,
    %c6 = arith.constant 6 : index
    %c0_146 = arith.constant 0 : index
    %c0_147 = arith.constant 0 : index
    %373 = vector.load %arg3[%c6, %c0_146, %c0_147] : memref<9x1x256xf32, #tpu.memory_space<vmem>>, vector<1x1x256xf32>
    %374 = vector.shape_cast %373 : vector<1x1x256xf32> to vector<1x256xf32>
    %375 = vector.extract_strided_slice %327 {offsets = [0, 15], sizes = [72, 241], strides = [1, 1]} : vector<72x256xf32> to vector<72x241xf32>
    %376 = vector.extract_strided_slice %327 {offsets = [0, 0], sizes = [72, 15], strides = [1, 1]} : vector<72x256xf32> to vector<72x15xf32>
    %377 = tpu.concatenate %375, %376 in 1 : vector<72x241xf32>, vector<72x15xf32> -> vector<72x256xf32>
    %378 = vector.broadcast %374 : vector<1x256xf32> to vector<72x256xf32>
    %379 = arith.mulf %377, %378 : vector<72x256xf32>
    %c432 = arith.constant 432 : index
    %c0_148 = arith.constant 0 : index
    %380 = vector.load %arg7[%c432, %c0_148] : memref<648x256xf32, #tpu.memory_space<vmem>>, vector<72x256xf32>
    tpu.vector_store %arg7[%c432, %c0_148], %379 {strides = array<i32>} : memref<648x256xf32, #tpu.memory_space<vmem>>, vector<72x256xf32>,
    %c7 = arith.constant 7 : index
    %c0_149 = arith.constant 0 : index
    %c0_150 = arith.constant 0 : index
    %381 = vector.load %arg3[%c7, %c0_149, %c0_150] : memref<9x1x256xf32, #tpu.memory_space<vmem>>, vector<1x1x256xf32>
    %382 = vector.shape_cast %381 : vector<1x1x256xf32> to vector<1x256xf32>
    %383 = vector.extract_strided_slice %327 {offsets = [0, 16], sizes = [72, 240], strides = [1, 1]} : vector<72x256xf32> to vector<72x240xf32>
    %384 = vector.extract_strided_slice %327 {offsets = [0, 0], sizes = [72, 16], strides = [1, 1]} : vector<72x256xf32> to vector<72x16xf32>
    %385 = tpu.concatenate %383, %384 in 1 : vector<72x240xf32>, vector<72x16xf32> -> vector<72x256xf32>
    %386 = vector.broadcast %382 : vector<1x256xf32> to vector<72x256xf32>
    %387 = arith.mulf %385, %386 : vector<72x256xf32>
    %c504 = arith.constant 504 : index
    %c0_151 = arith.constant 0 : index
    %388 = vector.load %arg7[%c504, %c0_151] : memref<648x256xf32, #tpu.memory_space<vmem>>, vector<72x256xf32>
    tpu.vector_store %arg7[%c504, %c0_151], %387 {strides = array<i32>} : memref<648x256xf32, #tpu.memory_space<vmem>>, vector<72x256xf32>,
    %c8_152 = arith.constant 8 : index
    %c0_153 = arith.constant 0 : index
    %c0_154 = arith.constant 0 : index
    %389 = vector.load %arg3[%c8_152, %c0_153, %c0_154] : memref<9x1x256xf32, #tpu.memory_space<vmem>>, vector<1x1x256xf32>
    %390 = vector.shape_cast %389 : vector<1x1x256xf32> to vector<1x256xf32>
    %391 = vector.extract_strided_slice %327 {offsets = [0, 17], sizes = [72, 239], strides = [1, 1]} : vector<72x256xf32> to vector<72x239xf32>
    %392 = vector.extract_strided_slice %327 {offsets = [0, 0], sizes = [72, 17], strides = [1, 1]} : vector<72x256xf32> to vector<72x17xf32>
    %393 = tpu.concatenate %391, %392 in 1 : vector<72x239xf32>, vector<72x17xf32> -> vector<72x256xf32>
    %394 = vector.broadcast %390 : vector<1x256xf32> to vector<72x256xf32>
    %395 = arith.mulf %393, %394 : vector<72x256xf32>
    %c576 = arith.constant 576 : index
    %c0_155 = arith.constant 0 : index
    %396 = vector.load %arg7[%c576, %c0_155] : memref<648x256xf32, #tpu.memory_space<vmem>>, vector<72x256xf32>
    tpu.vector_store %arg7[%c576, %c0_155], %395 {strides = array<i32>} : memref<648x256xf32, #tpu.memory_space<vmem>>, vector<72x256xf32>,
    %c0_156 = arith.constant 0 : index
    %c0_157 = arith.constant 0 : index
    %397 = vector.load %arg4[%c0_156, %c0_157] : memref<8x648xf32, #tpu.memory_space<vmem>>, vector<8x648xf32>
    %c0_158 = arith.constant 0 : index
    %c0_159 = arith.constant 0 : index
    %398 = vector.load %arg7[%c0_158, %c0_159] : memref<648x256xf32, #tpu.memory_space<vmem>>, vector<648x256xf32>
    %cst_160 = arith.constant dense<0.000000e+00> : vector<8x256xf32>
    %399 = tpu.matmul %397, %398, %cst_160 {dimension_numbers = #tpu.dot_dimension_numbers<[1], [0], [0], [1], [0, 0, 1, 1], [], []>} : vector<8x648xf32>, vector<648x256xf32>, vector<8x256xf32> -> vector<8x256xf32>
    %cst_161 = arith.constant dense<0.000000e+00> : vector<8xf32>
    %400 = vector.multi_reduction <add>, %399, %cst_161 [1] : vector<8x256xf32> to vector<8xf32>
    %401 = vector.shape_cast %400 : vector<8xf32> to vector<8x1xf32>
    %cst_162 = arith.constant 3.906250e-03 : f32
    %402 = vector.broadcast %cst_162 : f32 to vector<8x1xf32>
    %403 = arith.mulf %401, %402 : vector<8x1xf32>
    %404 = arith.mulf %399, %399 : vector<8x256xf32>
    %cst_163 = arith.constant dense<0.000000e+00> : vector<8xf32>
    %405 = vector.multi_reduction <add>, %404, %cst_163 [1] : vector<8x256xf32> to vector<8xf32>
    %406 = vector.shape_cast %405 : vector<8xf32> to vector<8x1xf32>
    %cst_164 = arith.constant 3.906250e-03 : f32
    %407 = vector.broadcast %cst_164 : f32 to vector<8x1xf32>
    %408 = arith.mulf %406, %407 : vector<8x1xf32>
    %409 = arith.mulf %403, %403 : vector<8x1xf32>
    %410 = arith.subf %408, %409 : vector<8x1xf32>
    %411 = vector.broadcast %403 : vector<8x1xf32> to vector<8x256xf32>
    %412 = arith.subf %399, %411 : vector<8x256xf32>
    %cst_165 = arith.constant 9.99999974E-6 : f32
    %413 = vector.broadcast %cst_165 : f32 to vector<8x1xf32>
    %414 = arith.addf %410, %413 : vector<8x1xf32>
    %415 = math.rsqrt %414 : vector<8x1xf32>
    %416 = vector.broadcast %415 : vector<8x1xf32> to vector<8x256xf32>
    %417 = arith.mulf %412, %416 : vector<8x256xf32>
    %c0_166 = arith.constant 0 : index
    %418 = memref.load %arg1[%c0_166] : memref<1xf32, #tpu.memory_space<smem>>
    %cst_167 = arith.constant 0.000000e+00 : f32
    %419 = vector.broadcast %cst_167 : f32 to vector<8x256xf32>
    %420 = arith.cmpf oge, %417, %419 : vector<8x256xf32>
    %421 = vector.broadcast %418 : f32 to vector<8x256xf32>
    %422 = arith.mulf %421, %417 : vector<8x256xf32>
    %423 = arith.select %420, %417, %422 : vector<8x256xi1>, vector<8x256xf32>
    %c0_168 = arith.constant 0 : index
    %c0_169 = arith.constant 0 : index
    %c0_170 = arith.constant 0 : index
    %424 = vector.load %arg5[%c0_168, %c0_169, %c0_170] : memref<1x8x256xf32, #tpu.memory_space<vmem>>, vector<1x8x256xf32>
    %425 = vector.shape_cast %424 : vector<1x8x256xf32> to vector<8x256xf32>
    %426 = vector.shape_cast %423 : vector<8x256xf32> to vector<1x8x256xf32>
    tpu.vector_store %arg5[%c0_168, %c0_169, %c0_170], %426 {strides = array<i32>} : memref<1x8x256xf32, #tpu.memory_space<vmem>>, vector<1x8x256xf32>,
    return
  }
  func.func @transform_0(%arg0: i32) -> i32 {
    %c0_i32 = arith.constant 0 : i32
    %c0_i32_0 = arith.constant 0 : i32
    return %c0_i32 : i32
  }
  func.func @transform_1(%arg0: i32) -> (i32, i32, i32) {
    %c0_i32 = arith.constant 0 : i32
    %c0_i32_0 = arith.constant 0 : i32
    %c0_i32_1 = arith.constant 0 : i32
    return %arg0, %c0_i32, %c0_i32_0 : i32, i32, i32
  }
  func.func @transform_2(%arg0: i32) -> (i32, i32, i32) {
    %c0_i32 = arith.constant 0 : i32
    %c0_i32_0 = arith.constant 0 : i32
    %c0_i32_1 = arith.constant 0 : i32
    %c0_i32_2 = arith.constant 0 : i32
    return %c0_i32, %c0_i32_0, %c0_i32_1 : i32, i32, i32
  }
  func.func @transform_3(%arg0: i32) -> (i32, i32) {
    %c0_i32 = arith.constant 0 : i32
    %c0_i32_0 = arith.constant 0 : i32
    %c0_i32_1 = arith.constant 0 : i32
    return %c0_i32, %c0_i32_0 : i32, i32
  }
  func.func @transform_4(%arg0: i32) -> (i32, i32, i32) {
    %c0_i32 = arith.constant 0 : i32
    %c0_i32_0 = arith.constant 0 : i32
    %c0_i32_1 = arith.constant 0 : i32
    return %arg0, %c0_i32, %c0_i32_0 : i32, i32, i32
  }
}

</mosaic_0001>

<bundles_post_ra>
// kernel: tpu_custom_call.1
= control target key start
LH: loop header
LB: loop body
LE: loop exit
PB: predicated region body
PF: predicated region fallthrough
CT: control target
= control target key end

     0   :  { %s3767_s0 = inlined_call_operand.<no memory space> [shape: f32[1], index: 0, kind: input, shape index: {}]   ;;  %s3768_s1 = inlined_call_operand.hbm [shape: f32[2,4,256], index: 1, kind: input, shape index: {}]   ;;  %s3769_s2 = inlined_call_operand.hbm [shape: f32[9,1,256], index: 2, kind: input, shape index: {}]   ;;  %s3770_s3 = inlined_call_operand.hbm [shape: f32[8,648], index: 3, kind: input, shape index: {}]   ;;  %s3771_s4 = inlined_call_operand.hbm [shape: f32[2,8,256], index: 4, kind: output, shape index: {}]  }
   0x1   :  { %9 = sst [smem:[#allocation4]] %s3767_s0 }
   0x2   :  { %10 = vsyncpa [#allocation6], 0 }
   0x3   :  { %12 = vsyncpa [#allocation6 + $0x1], 0 }
   0x4   :  { %13 = vsyncpa [#allocation9], 0 }
   0x5   :  { %14 = vsyncpa [#allocation7], 0 }
   0x6   :  { %16 = vsyncpa [#allocation7 + $0x1], 0  ;;  %s2635_s17 = smov 0   ;;  %s2637_s18 = smov 0  }
   0x7   :  { %s2639_s19 = smov 0   ;;  %s2641_s20 = smov 0  }
   0x8 LB: > { %s2656_s0 = sadd.s32 4294967295, %s2590_s20   ;;  %s2141_s21 = sadd.s32 4294967294, %s2590_s20   ;;  %s2590_s20 = sphi %s2641_s20, %s3799_s20   ;;  %s2586_s19 = sphi %s2639_s19, %s3798_s19   ;;  %s2582_s18 = sphi %s2637_s18, %s3797_s18   ;;  %s2578_s17 = sphi %s2635_s17, %s3796_s17  }
   0x9   : > { %p63_p0 = scmp.ne.s32.totalorder %s2582_s18, %s2578_s17  ;;  %p3772_p1 = scmp.eq.s32.totalorder %s2656_s0, 0 }
   0xa   : > { %p135_p3 = scmp.eq.s32.totalorder %s2141_s21, 1  ;;  %p2142_p5 = scmp.ge.s32.totalorder %s2590_s20, 1 }
   0xb   : > { %p2665_p4 = por %p3772_p1, %p63_p0  ;;  %p142_p7 = scmp.lt.s32.totalorder %s2590_s20, 3 }
   0xc   : > { %p2670_p6 = por %p135_p3, %p63_p0  ;;  %s2592_s25 = smov [#allocation8]  }
   0xd   : > { %s3779_s22 = scalar_select %p2665_p4, 1, 0 }
   0xe   : > { %s3780_s23 = scalar_select %p2670_p6, 1, 0 }
   0xf   : > { %p2675_p8 = pnand %p2142_p5, %p142_p7  ;;  %s157_s26 = sshll.u32 %s2592_s25, 4  ;;  %s2679_s26 = int_to_ptr.vmem [resolvable:$true] %s157_s26 }
  0x10   : > { %s2593_s28 = smov [#allocation10]   ;;  %s2434_s6 = scalar_lea.hbm %s3769_s2, 288 }
  0x11   : > { %p2349_p9 = pneg %p2675_p8  ;;  %s171_s29 = sshll.u32 %s2593_s28, 4  ;;  %s2690_s29 = int_to_ptr.vmem [resolvable:$true] %s171_s29 }
  0x12   : > { %p2435_p12 = scmp.ne.s32.totalorder %s3769_s2, %s2434_s6  ;;  %p2441_p5 = scmp.lt.u32.totalorder %s2434_s6, %s3769_s2 }
  0x13   : > { %p2686_p11 = pnand %p2349_p9, %p3772_p1 }
  0x15   : > { %p2436_p13 = pneg %p2686_p11 }
  0x17   : > { %p2437_p0 = pnand %p2436_p13, %p2435_p12 }
  0x19   : > { %p2438_p3 = pneg %p2437_p0 }
  0x1b   : > { %p2443_p7 = pnand %p2441_p5, %p2438_p3 }
  0x1d   : > { %2446 = shalt.err (!%p2443_p7)
}
  0x1e   : > { %s2447_s11 = scalar_lea.vmem %s2679_s26, 288  ;;  %p2455_p2 = scmp.lt.s32.totalorder %s2679_s26, %s2679_s26 }
  0x1f   : > { %p2448_p9 = scmp.ne.s32.totalorder %s2679_s26, %s2447_s11  ;;  %p2456_p12 = scmp.lt.s32.totalorder %s2447_s11, %s2447_s11 }
  0x21   : > { %p2450_p10 = pnand %p2448_p9, %p2436_p13  ;;  %p2457_p0 = por %p2456_p12, %p2455_p2 }
  0x23   : > { %p2451_p1 = pneg %p2450_p10 }
  0x25   : > { %p2458_p6 = pnand %p2457_p0, %p2451_p1 }
  0x27   : > { %2461 = shalt.err (!%p2458_p6)
}
  0x28   : > { %s2594_s12 = smov 32   ;;  %s2595_s13 = smov 2  }
  0x29   : > { %2352 = dma.hbm_to_vmem [thread:$0]  (!%p2686_p11), %s3769_s2, 288, %s2679_s26, [#allocation9], %s2594_s12, %s2594_s12, %s2595_s13  }
  0x2a   : > { %s2462_s25 = scalar_lea.hbm %s3770_s3, 768 }
  0x2b   : > { %p2463_p2 = scmp.ne.s32.totalorder %s3770_s3, %s2462_s25  ;;  %p2469_p10 = scmp.lt.u32.totalorder %s2462_s25, %s3770_s3 }
  0x2d   : > { %p2465_p1 = pnand %p2463_p2, %p2436_p13 }
  0x2f   : > { %p2466_p6 = pneg %p2465_p1 }
  0x31   : > { %p2471_p3 = pnand %p2469_p10, %p2466_p6 }
  0x33   : > { %2474 = shalt.err (!%p2471_p3)
}
  0x34   : > { %s2475_s26 = scalar_lea.vmem %s2690_s29, 768  ;;  %p2483_p12 = scmp.lt.s32.totalorder %s2690_s29, %s2690_s29 }
  0x35   : > { %p2476_p5 = scmp.ne.s32.totalorder %s2690_s29, %s2475_s26  ;;  %p2484_p0 = scmp.lt.s32.totalorder %s2475_s26, %s2475_s26 }
  0x37   : > { %p2478_p7 = pnand %p2476_p5, %p2436_p13  ;;  %p2485_p2 = por %p2484_p0, %p2483_p12 }
  0x39   : > { %p2479_p9 = pneg %p2478_p7 }
  0x3b   : > { %p2486_p1 = pnand %p2485_p2, %p2479_p9 }
  0x3d   : > { %2489 = shalt.err (!%p2486_p1)
}
  0x3e   : > { %2355 = dma.hbm_to_vmem [thread:$0]  (!%p2686_p11), %s3770_s3, 768, %s2690_s29, [#allocation9]  }
  0x3f   : > { %s2745_s9 = sadd.s32 1, %s2590_s20   ;;  %s50_s27 = sadd.s32 1, %s2586_s19 }
  0x40   : > { %s47_s10 = ssub.s32 %s2590_s20, %s2745_s9  ;;  %p57_p13 = scmp.ne.s32.totalorder %s2586_s19, %s2582_s18 }
  0x41   : > { %p48_p6 = scmp.eq.s32.totalorder %s47_s10, 0  ;;  %p58_p10 = scmp.eq.s32.totalorder %s2590_s20, 0 }
  0x42   : > { %p3783_p3 = scmp.eq.s32.totalorder %s2656_s0, 1  ;;  %p2366_p7 = scmp.lt.s32.totalorder %s2590_s20, 2 }
  0x43   : > { %s2761_s12 = scalar_select %p48_p6, %s2586_s19, %s50_s27  }
  0x44   : > { %p2755_p5 = por %p3783_p3, %p57_p13  ;;  %p59_p9 = por %p58_p10, %p57_p13 }
  0x45   : > { %s182_s13 = sand.u32 1, %s2586_s19   ;;  %s2171_s29 = sshll.u32 %s2590_s20, 7 }
  0x46   : > { %s3784_s11 = scalar_select %p2755_p5, 1, 0 }
  0x47   : > { %s2146_s14 = sshll.u32 %s182_s13, 3  ;;  %s2768_s21 = scalar_lea.hbm %s3768_s1, %s2171_s29 }
  0x48   : > { %s186_s25 = scalar_lea.vmem [#allocation5], %s2146_s14  ;;  %p2772_p11 = pnand %p2366_p7, %p59_p9 }
  0x49   : > { %s194_s28 = sshll.u32 %s186_s25, 4  ;;  %s183_s5 = scalar_lea.sflag [#allocation6], %s182_s13  ;;  %s2770_s28 = int_to_ptr.vmem [resolvable:$true] %s194_s28 }
  0x4a   : > { %s2490_s6 = scalar_lea.hbm %s2768_s21, 128  ;;  %p2492_p0 = pneg %p2772_p11 }
  0x4b   : > { %p2491_p12 = scmp.ne.s32.totalorder %s2768_s21, %s2490_s6  ;;  %s2495_s8 = scalar_lea.hbm %s3768_s1, 256 }
  0x4c   : > { %p2496_p13 = scmp.lt.u32.totalorder %s2768_s21, %s3768_s1  ;;  %p2497_p6 = scmp.lt.u32.totalorder %s2495_s8, %s2490_s6 }
  0x4d   : > { %p2493_p2 = pnand %p2492_p0, %p2491_p12  ;;  %p2499_p3 = scmp.lt.u32.totalorder %s2490_s6, %s2768_s21 }
  0x4e   : > { %p2498_p10 = por %p2497_p6, %p2496_p13 }
  0x4f   : > { %p2494_p1 = pneg %p2493_p2 }
  0x50   : > { %p2500_p7 = por %p2499_p3, %p2498_p10 }
  0x52   : > { %p2501_p9 = pnand %p2500_p7, %p2494_p1 }
  0x54   : > { %2504 = shalt.err (!%p2501_p9)
}
  0x55   : > { %s2505_s13 = scalar_lea.vmem %s2770_s28, 128  ;;  %s2596_s14 = smov [#allocation5]  }
  0x56   : > { %p2506_p12 = scmp.ne.s32.totalorder %s2770_s28, %s2505_s13  ;;  %s2510_s29 = sshll.u32 %s2596_s14, 4  ;;  %s2511_s29 = int_to_ptr.vmem [resolvable:$false] %s2510_s29 }
  0x57   : > { %s2512_s15 = scalar_lea.vmem %s2511_s29, 256  ;;  %p2513_p4 = scmp.lt.s32.totalorder %s2770_s28, %s2511_s29 }
  0x58   : > { %p2508_p2 = pnand %p2506_p12, %p2492_p0  ;;  %p2514_p13 = scmp.lt.s32.totalorder %s2512_s15, %s2505_s13 }
  0x5a   : > { %p2509_p5 = pneg %p2508_p2  ;;  %p2515_p6 = por %p2514_p13, %p2513_p4 }
  0x5c   : > { %p2516_p10 = pnand %p2515_p6, %p2509_p5 }
  0x5e   : > { %2519 = shalt.err (!%p2516_p10)
}
  0x5f   : > { %2359 = dma.hbm_to_vmem [thread:$0]  (!%p2772_p11), %s2768_s21, 128, %s2770_s28, %s183_s5  }
  0x60   : > { %203 = sbr.rel (%p2675_p8) target bundleno = 963 (0x3c3), region = 36 }
  0x67   : > { %s2804_s16 = sand.u32 1, %s2582_s18   ;;  %p3786_p4 = scmp.ne.s32.totalorder %s3779_s22, 0 }
  0x68   : > { %s2150_s25 = sshll.u32 %s2804_s16, 3  ;;  %s206_s6 = scalar_lea.sflag [#allocation6], %s2804_s16 }
  0x69   : > { %s209_s26 = scalar_lea.vmem [#allocation5], %s2150_s25 }
  0x6a   : > { %2565 = dma.done.wait (%p3786_p4), %s206_s6, 128  }
  0x6b   : > { %2567 = vsyncadd (%p3786_p4), %s206_s6, 4294967168  ;;  %p3787_p5 = scmp.eq.s32.totalorder %s2656_s0, 0 }
  0x6d   : > { %2569 = dma.done.wait (%p3787_p5), [#allocation9], 1056   ;;  %p3788_p11 = pmov %p3787_p5 }
  0x6e   : > { %v2597_v0 = vmov 0.0   ;;  %v2834_v1 = vld [vmem:[%s209_s26] sm:$0xff]  ;;  %s2598_s22 = smov 1   ;;  %s2599_s24 = smov 127   ;;  %vm967_vm13 = vcmask 7168   ;;  %vm1138_vm14 = vcmask 1039360  }
  0x6f   : > { %2571 = vsyncadd (%p3788_p11), [#allocation9], 4294966240  ;;  %257 = vst [vmem:[#allocation2 + $0x70] sm:$0xff] %v2597_v0  ;;  %vm309_vm0 = vcmp.ge.f32.partialorder %v2834_v1, 0.2  ;;  %vm315_vm2 = vcmp.ge.f32.partialorder %v2834_v1, 1.0 }
  0x70   : > { %243 = vst [vmem:[#allocation2] sm:$0xff] %v2597_v0  ;;  %244 = vst [vmem:[#allocation2 + $0x8] sm:$0xff] %v2597_v0  ;;  %vm312_vm1 = vcmp.ge.f32.partialorder %v2834_v1, 0.6  ;;  %v2840_v2 = vadd.f32 -1.0, %v2834_v1  ;;  %v310_v3 = vsel %vm309_vm0, 1.0, %v2597_v0 }
  0x71   : > { %245 = vst [vmem:[#allocation2 + $0x10] sm:$0xff] %v2597_v0  ;;  %246 = vst [vmem:[#allocation2 + $0x18] sm:$0xff] %v2597_v0  ;;  %v313_v4 = vsel %vm312_vm1, 1.0, %v2597_v0  ;;  %v316_v5 = vsel %vm315_vm2, 1.0, %v2597_v0  ;;  %vm318_vm3 = vcmp.ge.f32.partialorder %v2834_v1, 1.4 }
  0x72   : > { %247 = vst [vmem:[#allocation2 + $0x20] sm:$0xff] %v2597_v0  ;;  %248 = vst [vmem:[#allocation2 + $0x28] sm:$0xff] %v2597_v0  ;;  %v314_v6 = vsub.f32 %v310_v3, %v313_v4  ;;  %v317_v7 = vsub.f32 %v313_v4, %v316_v5  ;;  %v319_v8 = vsel %vm318_vm3, 1.0, %v2597_v0  ;;  %vm321_vm4 = vcmp.ge.f32.partialorder %v2834_v1, 1.8  ;;  %s2600_s21 = smov 17  }
  0x73   : > { %249 = vst [vmem:[#allocation2 + $0x30] sm:$0xff] %v2597_v0  ;;  %250 = vst [vmem:[#allocation2 + $0x38] sm:$0xff] %v2597_v0  ;;  %v320_v9 = vsub.f32 %v316_v5, %v319_v8  ;;  %v2849_v10 = vsel %vm321_vm4, 1.0, %v2597_v0  ;;  %v2160_v11 = vadd.f32 -0.2, %v2834_v1  ;;  %v366_v14 = vmul.f32 2.5, %v2840_v2 }
  0x74   : > { %251 = vst [vmem:[#allocation2 + $0x40] sm:$0xff] %v2597_v0  ;;  %252 = vst [vmem:[#allocation2 + $0x48] sm:$0xff] %v2597_v0  ;;  %v2161_v12 = vadd.f32 -0.6, %v2834_v1  ;;  %v323_v13 = vsub.f32 %v319_v8, %v2849_v10  ;;  %v2856_v15 = vadd.f32 -1.4, %v2834_v1 }
  0x75   : > { %253 = vst [vmem:[#allocation2 + $0x50] sm:$0xff] %v2597_v0  ;;  %254 = vst [vmem:[#allocation2 + $0x58] sm:$0xff] %v2597_v0  ;;  %v356_v16 = vmul.f32 2.5, %v2160_v11  ;;  %v402_v18 = vmul.f32 1.25, %v2160_v11  ;;  %v410_v19 = vmul.f32 1.25, %v2840_v2  ;;  %v367_v20 = vmul.f32 %v366_v14, %v320_v9  ;;  %s2601_s28 = smov 113  }
  0x76   : > { %255 = vst [vmem:[#allocation2 + $0x60] sm:$0xff] %v2597_v0  ;;  %256 = vst [vmem:[#allocation2 + $0x68] sm:$0xff] %v2597_v0  ;;  %v361_v17 = vmul.f32 2.5, %v2161_v12  ;;  %v371_v21 = vmul.f32 2.5, %v2856_v15  ;;  %v406_v22 = vmul.f32 1.25, %v2161_v12  ;;  %vm300_vm10 = vcmp.ge.f32.partialorder %v2834_v1, -1.0 }
  0x77   : > { %258 = vst [vmem:[#allocation2 + $0x78] sm:$0xff] %v2597_v0  ;;  %259 = vst [vmem:[#allocation2 + $0x80] sm:$0xff] %v2597_v0  ;;  %v440_v23 = vmul.f32 0.8333333, %v2160_v11  ;;  %v357_v24 = vmul.f32 %v356_v16, %v314_v6  ;;  %vm303_vm5 = vcmp.ge.f32.partialorder %v2834_v1, -0.6  ;;  %v368_v26 = vsub.f32 %v320_v9, %v367_v20 }
  0x78   : > { %260 = vst [vmem:[#allocation2 + $0x88] sm:$0xff] %v2597_v0  ;;  %v362_v25 = vmul.f32 %v361_v17, %v317_v7  ;;  %vm306_vm6 = vcmp.ge.f32.partialorder %v2834_v1, -0.2  ;;  %v2862_v27 = vmul.f32 %v371_v21, %v323_v13  ;;  %v304_v28 = vsel %vm303_vm5, 1.0, %v2597_v0  ;;  %s2602_s30 = smov 16   ;;  %s2603_s5 = smov 112  }
  0x79   : > { %v307_v29 = vsel %vm306_vm6, 1.0, %v2597_v0  ;;  %v444_v31 = vmul.f32 0.8333333, %v2161_v12  ;;  %v2158_v33 = vadd.f32 0.6, %v2834_v1  ;;  %v358_v40 = vsub.f32 %v314_v6, %v357_v24  ;;  %s2604_s7 = smov 15  }
  0x7a   : > { %v363_v30 = vsub.f32 %v317_v7, %v362_v25  ;;  %v2866_v32 = vsub.f32 %v304_v28, %v307_v29  ;;  %v369_v34 = vadd.f32 %v368_v26, %v362_v25  ;;  %v373_v35 = vsub.f32 %v323_v13, %v2862_v27  ;;  %s2605_s8 = smov 111   ;;  %s2027_s27 = sld [smem:[#allocation4]] }
  0x7b   : > { %v311_v36 = vsub.f32 %v307_v29, %v310_v3  ;;  %v2159_v37 = vadd.f32 0.2, %v2834_v1  ;;  %v346_v39 = vmul.f32 2.5, %v2158_v33  ;;  %v394_v41 = vmul.f32 1.25, %v2158_v33  ;;  %s2153_s10 = sshll.u32 %s2804_s16, 4  ;;  %s2172_s13 = sshll.u32 %s2656_s0, 8 }
  0x7c   : > { %v364_v38 = vadd.f32 %v363_v30, %v357_v24  ;;  %v374_v42 = vadd.f32 %v373_v35, %v367_v20  ;;  %v407_v43 = vmul.f32 %v406_v22, %v369_v34  ;;  %v432_v45 = vmul.f32 0.8333333, %v2158_v33  ;;  %s241_s14 = scalar_lea.vmem [#allocation11], %s2153_s10  ;;  %s3723_s6 = scalar_lea.hbm %s3771_s4, %s2172_s13 }
  0x7d   : > { %v351_v44 = vmul.f32 2.5, %v2159_v37  ;;  %v2872_v47 = vmul.f32 %v346_v39, %v2866_v32  ;;  %v398_v48 = vmul.f32 1.25, %v2159_v37  ;;  %vm292_vm7 = vcmp.ge.f32.partialorder %v2834_v1, -2.2  ;;  %s2052_s29 = sshll.u32 %s241_s14, 4  ;;  %s2038_s0 = scalar_lea.sflag [#allocation7], %s2804_s16  ;;  %s3725_s29 = int_to_ptr.vmem [resolvable:$true] %s2052_s29 }
  0x7e   : > { %v403_v46 = vmul.f32 %v402_v18, %v364_v38  ;;  %v408_v49 = vsub.f32 %v369_v34, %v407_v43  ;;  %v2875_v50 = vmul.f32 %v410_v19, %v374_v42  ;;  %v293_v52 = vsel %vm292_vm7, 1.0, %v2597_v0  ;;  %s2520_s26 = scalar_lea.vmem %s3725_s29, 256  ;;  %p3793_p0 = scmp.ne.s32.totalorder %s3784_s11, 0 }
  0x7f   : > { %v352_v51 = vmul.f32 %v351_v44, %v311_v36  ;;  %vm294_vm8 = vcmp.ge.f32.partialorder %v2834_v1, -1.8  ;;  %vm297_vm9 = vcmp.ge.f32.partialorder %v2834_v1, -1.4  ;;  %v436_v58 = vmul.f32 0.8333333, %v2159_v37  ;;  %p2521_p8 = scmp.ne.s32.totalorder %s3725_s29, %s2520_s26 }
  0x80   : > { %v404_v53 = vsub.f32 %v364_v38, %v403_v46  ;;  %v409_v54 = vadd.f32 %v408_v49, %v403_v46  ;;  %v412_v55 = vsub.f32 %v374_v42, %v2875_v50  ;;  %v295_v59 = vsel %vm294_vm8, 1.0, %v2597_v0 }
  0x81   : > { %v353_v56 = vsub.f32 %v311_v36, %v352_v51  ;;  %v359_v57 = vadd.f32 %v358_v40, %v352_v51  ;;  %v298_v60 = vsel %vm297_vm9, 1.0, %v2597_v0  ;;  %v2154_v61 = vadd.f32 2.2, %v2834_v1  ;;  %p2522_p1 = pnand %p2521_p8, %p3793_p0 }
  0x82   : > { %v413_v62 = vadd.f32 %v412_v55, %v407_v43  ;;  %v301_v4 = vsel %vm300_vm10, 1.0, %v2597_v0  ;;  %v441_v5 = vmul.f32 %v440_v23, %v409_v54  ;;  %v296_v6 = vsub.f32 %v293_v52, %v295_v59 }
  0x83   : > { %v2886_v63 = vadd.f32 %v353_v56, %v2872_v47  ;;  %v399_v3 = vmul.f32 %v398_v48, %v359_v57  ;;  %v299_v7 = vsub.f32 %v295_v59, %v298_v60  ;;  %v302_v8 = vsub.f32 %v298_v60, %v301_v4  ;;  %p2523_p3 = pneg %p2522_p1 }
  0x84   : > { %v2889_v9 = vmul.f32 %v444_v31, %v413_v62  ;;  %v442_v14 = vsub.f32 %v409_v54, %v441_v5  ;;  %v328_v16 = vmul.f32 2.5, %v2154_v61  ;;  %v2155_v17 = vadd.f32 1.8, %v2834_v1 }
  0x85   : > { %v2892_v11 = vmul.f32 %v394_v41, %v2886_v63  ;;  %v400_v12 = vsub.f32 %v359_v57, %v399_v3  ;;  %v405_v13 = vadd.f32 %v404_v53, %v399_v3  ;;  %v2156_v18 = vadd.f32 1.4, %v2834_v1 }
  0x86   : > { %v446_v19 = vsub.f32 %v413_v62, %v2889_v9  ;;  %v2157_v22 = vadd.f32 1.0, %v2834_v1  ;;  %v305_v23 = vsub.f32 %v301_v4, %v304_v28  ;;  %v331_v24 = vmul.f32 2.5, %v2155_v17 }
  0x87   : > { %v2898_v20 = vadd.f32 %v400_v12, %v2892_v11  ;;  %v437_v21 = vmul.f32 %v436_v58, %v405_v13  ;;  %v336_v25 = vmul.f32 2.5, %v2156_v18  ;;  %v329_v33 = vmul.f32 %v328_v16, %v296_v6 }
  0x88   : > { %v447_v26 = vadd.f32 %v446_v19, %v441_v5  ;;  %v332_v34 = vmul.f32 %v331_v24, %v299_v7  ;;  %v341_v36 = vmul.f32 2.5, %v2157_v22  ;;  %v380_v38 = vmul.f32 1.25, %v2154_v61 }
  0x89   : > { %v2902_v29 = vmul.f32 %v432_v45, %v2898_v20  ;;  %v438_v30 = vsub.f32 %v405_v13, %v437_v21  ;;  %v443_v31 = vadd.f32 %v442_v14, %v437_v21  ;;  %v337_v35 = vmul.f32 %v336_v25, %v302_v8 }
  0x8a   : > { %485 = vst [vmem:[#allocation2 + $0x70] sm:$0xf] %v447_v26  ;;  %v382_v39 = vmul.f32 1.25, %v2155_v17  ;;  %v333_v40 = vsub.f32 %v299_v7, %v332_v34  ;;  %v342_v41 = vmul.f32 %v341_v36, %v305_v23  ;;  %vm324_vm11 = vcmp.ge.f32.partialorder %v2834_v1, 2.2 }
  0x8b   : > { %v439_v37 = vadd.f32 %v438_v30, %v2902_v29  ;;  %480 = vst [vmem:[#allocation2 + $0x60] sm:$0xf] %v443_v31  ;;  %v338_v28 = vsub.f32 %v302_v8, %v337_v35  ;;  %v386_v42 = vmul.f32 1.25, %v2156_v18  ;;  %v418_v43 = vmul.f32 0.8333333, %v2154_v61 }
  0x8c   : > { %v325_v44 = vsel %vm324_vm11, 1.0, %v2597_v0  ;;  %v2164_v45 = vadd.f32 -1.8, %v2834_v1  ;;  %v334_v46 = vadd.f32 %v333_v40, %v329_v33  ;;  %v343_v49 = vsub.f32 %v305_v23, %v342_v41 }
  0x8d   : > { %475 = vst [vmem:[#allocation2 + $0x50] sm:$0xf] %v439_v37  ;;  %v339_v48 = vadd.f32 %v338_v28, %v332_v34  ;;  %v326_v51 = vsub.f32 %v2849_v10, %v325_v44  ;;  %v420_v52 = vmul.f32 0.8333333, %v2155_v17  ;;  %v348_v54 = vsub.f32 %v2866_v32, %v2872_v47 }
  0x8e   : > { %v376_v53 = vmul.f32 2.5, %v2164_v45  ;;  %v390_v55 = vmul.f32 1.25, %v2157_v22  ;;  %v344_v56 = vadd.f32 %v343_v49, %v337_v35  ;;  %v381_v57 = vmul.f32 %v380_v38, %v334_v46 }
  0x8f   : > { %v383_v58 = vmul.f32 %v382_v39, %v339_v48  ;;  %v414_v59 = vmul.f32 1.25, %v2856_v15  ;;  %v349_v0 = vadd.f32 %v348_v54, %v342_v41  ;;  %v396_v61 = vsub.f32 %v2886_v63, %v2892_v11 }
  0x90   : > { %v377_v60 = vmul.f32 %v376_v53, %v326_v51  ;;  %v428_v62 = vmul.f32 0.8333333, %v2157_v22  ;;  %v387_v4 = vmul.f32 %v386_v42, %v344_v56  ;;  %v473_v5 = vcombine.high %v439_v37, %v439_v37 }
  0x91   : > { %v2914_v3 = vld [vmem:[#allocation2 + $0x70] sm:$0xff]  ;;  %v384_v10 = vsub.f32 %v339_v48, %v383_v58  ;;  %v478_v6 = vcombine.high %v443_v31, %v443_v31  ;;  %v391_v47 = vmul.f32 %v390_v55, %v349_v0  ;;  %v483_v7 = vcombine.high %v447_v26, %v447_v26 }
  0x92   : > { %963 = vrot.lane.b32.xlu0 %v2914_v3, %s2598_s22  ;;  %v378_v32 = vsub.f32 %v326_v51, %v377_v60  ;;  %v2919_v15 = vmul.f32 0.70710677, %v2834_v1  ;;  %v388_v11 = vsub.f32 %v344_v56, %v387_v4  ;;  %v424_v12 = vmul.f32 0.8333333, %v2156_v18  ;;  %476 = vst [vmem:[#allocation2 + $0x58] sm:$0xf] %v473_v5 }
  0x93   : > { %v385_v63 = vadd.f32 %v384_v10, %v381_v57  ;;  %v434_v13 = vsub.f32 %v2898_v20, %v2902_v29  ;;  %481 = vst [vmem:[#allocation2 + $0x68] sm:$0xf] %v478_v6  ;;  %v392_v16 = vsub.f32 %v349_v0, %v391_v47  ;;  %v397_v17 = vadd.f32 %v396_v61, %v391_v47  ;;  %v2929_v21 = vld [vmem:[#allocation2 + $0x60] sm:$0xff] }
  0x94   : > { %v2921_v8 = vld [vmem:[#allocation2 + $0x50] sm:$0xff]  ;;  %v379_v14 = vadd.f32 %v378_v32, %v2862_v27  ;;  %486 = vst [vmem:[#allocation2 + $0x78] sm:$0xf] %v483_v7  ;;  %v262_v19 = vand.u32 2147483647, %v2919_v15  ;;  %v389_v22 = vadd.f32 %v388_v11, %v383_v58  ;;  %vm281_vm12 = vcmp.ge.f32.partialorder %v2919_v15, 0.0 }
  0x95   : > { %959 = vrot.lane.b32.xlu1 %v2921_v8, %s2598_s22  ;;  %v393_v18 = vadd.f32 %v392_v16, %v387_v4  ;;  %v429_v24 = vmul.f32 %v428_v62, %v397_v17  ;;  %v419_v20 = vmul.f32 %v418_v43, %v385_v63  ;;  %v448_v29 = vmul.f32 0.8333333, %v2840_v2 }
  0x96   : > { %v415_v23 = vmul.f32 %v414_v59, %v379_v14  ;;  %v263_v25 = vmul.f32 0.3275911, %v262_v19  ;;  %v421_v26 = vmul.f32 %v420_v52, %v389_v22  ;;  %v275_v45 = vsub.f32 0.0, %v262_v19 }
  0x97   : > { %v425_v30 = vmul.f32 %v424_v12, %v393_v18  ;;  %v430_v31 = vsub.f32 %v397_v17, %v429_v24  ;;  %v435_v33 = vadd.f32 %v434_v13, %v429_v24  ;;  %v284_v13 = vmul.f32 0.5, %v2834_v1 }
  0x98   : > { %v416_v27 = vsub.f32 %v379_v14, %v415_v23  ;;  %v422_v34 = vsub.f32 %v389_v22, %v421_v26  ;;  %v264_v35 = vadd.f32 1.0, %v263_v25  ;;  %v276_v48 = vmul.f32 %v275_v45, %v262_v19 }
  0x99   : > { %961 = vrot.lane.b32.xlu1 %v2929_v21, %s2598_s22  ;;  %v426_v37 = vsub.f32 %v393_v18, %v425_v30  ;;  %v431_v38 = vadd.f32 %v430_v31, %v425_v30  ;;  %470 = vst [vmem:[#allocation2 + $0x40] sm:$0xf] %v435_v33  ;;  %v468_v39 = vcombine.high %v435_v33, %v435_v33  ;;  %v2974_v7 = vld [vmem:[#allocation2 + $0x58] sm:$0xff]  ;;  %vm574_vm15 = vcmask 138240  }
  0x9a   : > { %v417_v36 = vadd.f32 %v416_v27, %v2875_v50  ;;  %v423_v40 = vadd.f32 %v422_v34, %v419_v20  ;;  %2415 = vrcp.f32 %v264_v35  ;;  %v277_v54 = vmul.f32 1.442695, %v276_v48  ;;  %v2984_v14 = vld [vmem:[#allocation2 + $0x68] sm:$0xff] }
  0x9b   : > { %v427_v41 = vadd.f32 %v426_v37, %v421_v26  ;;  %465 = vst [vmem:[#allocation2 + $0x30] sm:$0xf] %v431_v38  ;;  %v463_v2 = vcombine.high %v431_v38, %v431_v38  ;;  %471 = vst [vmem:[#allocation2 + $0x48] sm:$0xf] %v468_v39  ;;  %v2992_v15 = vld [vmem:[#allocation2 + $0x78] sm:$0xff]  ;;  %v612_v35 = vlaneseq  ;;  %vm1269_vm0 = vcmask 924672  }
  0x9c   : > { %v449_v28 = vmul.f32 %v448_v29, %v417_v36  ;;  %455 = vst [vmem:[#allocation2 + $0x10] sm:$0xf] %v423_v40  ;;  %v453_v42 = vcombine.high %v423_v40, %v423_v40  ;;  %2417 = vpow2.f32 %v277_v54  ;;  %vm705_vm1 = vcmask 130048  }
  0x9d   : > { %460 = vst [vmem:[#allocation2 + $0x20] sm:$0xf] %v427_v41  ;;  %v458_v44 = vcombine.high %v427_v41, %v427_v41  ;;  %466 = vst [vmem:[#allocation2 + $0x38] sm:$0xf] %v463_v2  ;;  %v613_v38 = vshrl.u32 %v612_v35, 7  ;;  %vm1400_vm2 = vcmask 916480  }
  0x9e   : > { %v450_v43 = vsub.f32 %v417_v36, %v449_v28  ;;  %456 = vst [vmem:[#allocation2 + $0x18] sm:$0xf] %v453_v42  ;;  %v921_v42 = vld [vmem:[#allocation8 + $0x6] sm:$0x3]  ;;  %vm1792_vm3 = vcmask 64512   ;;  %vm836_vm4 = vcmask 121856  }
  0x9f   : > { %461 = vst [vmem:[#allocation2 + $0x28] sm:$0xf] %v458_v44  ;;  %v3126_v28 = vsub.s32 0, %v613_v38  ;;  %v3128_v41 = vsub.s32 1, %v613_v38  ;;  %v1052_v44 = vld [vmem:[#allocation8 + $0x8] sm:$0x3] }
  0xa0   : > { %v451_v50 = vadd.f32 %v450_v43, %v2889_v9  ;;  %v2954_v59 = vld [vmem:[#allocation2 + $0x40] sm:$0xff]  ;;  %vm1531_vm5 = vcmask 908288  }
  0xa1   : > { %v3142_v48 = vrot.slane %v921_v42, %v3128_v41 }
  0xa2   : > { %490 = vst [vmem:[#allocation2 + $0x80] sm:$0xf] %v451_v50  ;;  %v488_v46 = vcombine.high %v451_v50, %v451_v50  ;;  %v2948_v9 = vld [vmem:[#allocation2 + $0x30] sm:$0xff]  ;;  %v2986_v17 = vld [vmem:[#allocation2 + $0x48] sm:$0xff] }
  0xa3   : > { %v2936_v49 = vld [vmem:[#allocation2 + $0x10] sm:$0xff]  ;;  %3790 = vst [vmem:[#allocation16_spill] sm:$0xff] %v3142_v48 }
  0xa4   : > { %491 = vst [vmem:[#allocation2 + $0x88] sm:$0xf] %v488_v46  ;;  %v2416_v51 = vpop.eup %2415  ;;  %1106 = vrot.lane.b32.xlu0 %v2936_v49, %s2599_s24  ;;  %v2940_v52 = vld [vmem:[#allocation2 + $0x20] sm:$0xff]  ;;  %v2976_v11 = vld [vmem:[#allocation2 + $0x38] sm:$0xff]  ;;  %v3139_v46 = vrot.slane %v921_v42, %v3126_v28 }
  0xa5   : > { %v266_v53 = vmul.f32 1.0614054, %v2416_v51  ;;  %v2962_v10 = vld [vmem:[#allocation2 + $0x18] sm:$0xff] }
  0xa6   : > { %v2418_v5 = vpop.eup %2417  ;;  %v2968_v32 = vld [vmem:[#allocation2 + $0x28] sm:$0xff]  ;;  %3789 = vst [vmem:[#allocation15_spill] sm:$0xff] %v3139_v46 }
  0xa7   : > { %v267_v55 = vadd.f32 -1.4531521, %v266_v53  ;;  %v3145_v53 = vrot.slane %v1052_v44, %v3128_v41 }
  0xa8   : > { %1110 = vrot.lane.b32.xlu0 %v2940_v52, %s2599_s24 }
  0xa9   : > { %v2942_v56 = vld [vmem:[#allocation2 + $0x80] sm:$0xff]  ;;  %v268_v57 = vmul.f32 %v2416_v51, %v267_v55 }
  0xaa   : > { %965 = vrot.lane.b32.xlu1 %v2942_v56, %s2598_s22 }
  0xab   : > { %v269_v58 = vadd.f32 1.4214138, %v268_v57  ;;  %v2956_v0 = vld [vmem:[#allocation2 + $0x88] sm:$0xff] }
  0xac   : > { %1114 = vrot.lane.b32.xlu0 %v2948_v9, %s2599_s24 }
  0xad   : > { %v270_v60 = vmul.f32 %v2416_v51, %v269_v58 }
  0xae   : > { %558 = vrot.lane.b32.xlu1 %v2936_v49, %s2600_s21 }
  0xaf   : > { %v271_v61 = vadd.f32 -0.28449672, %v270_v60 }
  0xb0   : > { %1118 = vrot.lane.b32.xlu0 %v2954_v59, %s2599_s24 }
  0xb1   : > { %v272_v62 = vmul.f32 %v2416_v51, %v271_v61 }
  0xb2   : > { %938 = vrot.lane.b32.xlu1 %v2956_v0, %s2598_s22 }
  0xb3   : > { %v273_v4 = vadd.f32 0.2548296, %v272_v62 }
  0xb4   : > { %1122 = vrot.lane.b32.xlu0 %v2921_v8, %s2599_s24 }
  0xb5   : > { %v274_v6 = vmul.f32 %v2416_v51, %v273_v4 }
  0xb6   : > { %1108 = vrot.lane.b32.xlu1 %v2962_v10, %s2599_s24 }
  0xb7   : > { %v279_v47 = vmul.f32 %v2418_v5, %v274_v6  ;;  %v3162_v6 = vrot.slane %v1052_v44, %v3126_v28 }
  0xb8   : > { %1126 = vrot.lane.b32.xlu0 %v2929_v21, %s2599_s24 }
  0xb9   : > { %v280_v63 = vsub.f32 1.0, %v279_v47  ;;  %v1066_v38 = vmul.f32 %v3162_v6, %v2936_v49 }
  0xba   : > { %1112 = vrot.lane.b32.xlu1 %v2968_v32, %s2599_s24 }
  0xbb   : > { %v282_v12 = vsub.f32 0.0, %v280_v63 }
  0xbc   : > { %932 = vrot.lane.b32.xlu0 %v2974_v7, %s2598_s22 }
  0xbd   : > { %v283_v16 = vsel %vm281_vm12, %v280_v63, %v282_v12 }
  0xbe   : > { %1116 = vrot.lane.b32.xlu1 %v2976_v11, %s2599_s24  ;;  %v285_v19 = vadd.f32 1.0, %v283_v16  ;;  %v1067_v16 = vmul.f32 %v3145_v53, %v2962_v10 }
  0xc0   : > { %934 = vrot.lane.b32.xlu0 %v2984_v14, %s2598_s22  ;;  %v286_v22 = vmul.f32 %v285_v19, %v284_v13 }
  0xc2   : > { %1120 = vrot.lane.b32.xlu1 %v2986_v17, %s2599_s24  ;;  %290 = vst [vmem:[#allocation2] sm:$0xf] %v286_v22  ;;  %v288_v1 = vcombine.high %v286_v22, %v286_v22 }
  0xc4   : > { %936 = vrot.lane.b32.xlu0 %v2992_v15, %s2598_s22  ;;  %291 = vst [vmem:[#allocation2 + $0x8] sm:$0xf] %v288_v1 }
  0xc6   : > { %522 = vrot.lane.b32.xlu1 %v2962_v10, %s2600_s21 }
  0xc8   : > { %524 = vrot.lane.b32.xlu0 %v2968_v32, %s2600_s21 }
  0xc9   : > { %v3014_v23 = vld [vmem:[#allocation2] sm:$0xff] }
  0xca   : > { %1124 = vrot.lane.b32.xlu1 %v2974_v7, %s2599_s24 }
  0xcb   : > { %v3024_v18 = vld [vmem:[#allocation2 + $0x8] sm:$0xff] }
  0xcc   : > { %560 = vrot.lane.b32.xlu0 %v2940_v52, %s2600_s21  ;;  %v1065_v13 = vmul.f32 %v3145_v53, %v3024_v18 }
  0xce   : > { %1128 = vrot.lane.b32.xlu1 %v2984_v14, %s2599_s24 }
  0xd0   : > { %1130 = vrot.lane.b32.xlu0 %v2914_v3, %s2599_s24 }
  0xd2   : > { %526 = vrot.lane.b32.xlu1 %v2976_v11, %s2600_s21 }
  0xd4   : > { %1134 = vrot.lane.b32.xlu0 %v2942_v56, %s2599_s24 }
  0xd6   : > { %562 = vrot.lane.b32.xlu1 %v2948_v9, %s2600_s21 }
  0xd8   : > { %1102 = vrot.lane.b32.xlu0 %v3014_v23, %s2599_s24 }
  0xda   : > { %1132 = vrot.lane.b32.xlu1 %v2992_v15, %s2599_s24 }
  0xdc   : > { %556 = vrot.lane.b32.xlu0 %v3014_v23, %s2600_s21 }
  0xde   : > { %1136 = vrot.lane.b32.xlu1 %v2956_v0, %s2599_s24 }
  0xe0   : > { %520 = vrot.lane.b32.xlu0 %v3024_v18, %s2600_s21 }
  0xe2   : > { %1104 = vrot.lane.b32.xlu1 %v3024_v18, %s2599_s24 }
  0xe4   : > { %528 = vrot.lane.b32.xlu0 %v2986_v17, %s2600_s21 }
  0xe6   : > { %530 = vrot.lane.b32.xlu1 %v2974_v7, %s2600_s21 }
  0xe8   : > { %564 = vrot.lane.b32.xlu0 %v2954_v59, %s2600_s21 }
  0xea   : > { %566 = vrot.lane.b32.xlu1 %v2921_v8, %s2600_s21 }
  0xec   : > { %1233 = vrot.lane.b32.xlu0 %v3014_v23, %s2601_s28 }
  0xee   : > { %1235 = vrot.lane.b32.xlu1 %v3024_v18, %s2601_s28 }
  0xf0   : > { %1237 = vrot.lane.b32.xlu0 %v2936_v49, %s2601_s28 }
  0xf2   : > { %1239 = vrot.lane.b32.xlu1 %v2962_v10, %s2601_s28 }
  0xf4   : > { %532 = vrot.lane.b32.xlu0 %v2984_v14, %s2600_s21 }
  0xf6   : > { %534 = vrot.lane.b32.xlu1 %v2992_v15, %s2600_s21 }
  0xf8   : > { %568 = vrot.lane.b32.xlu0 %v2929_v21, %s2600_s21 }
  0xfa   : > { %570 = vrot.lane.b32.xlu1 %v2914_v3, %s2600_s21 }
  0xfc   : > { %1241 = vrot.lane.b32.xlu0 %v2940_v52, %s2601_s28 }
  0xfe   : > { %1243 = vrot.lane.b32.xlu1 %v2968_v32, %s2601_s28 }
 0x100   : > { %1245 = vrot.lane.b32.xlu0 %v2948_v9, %s2601_s28 }
 0x102   : > { %1247 = vrot.lane.b32.xlu1 %v2976_v11, %s2601_s28 }
 0x104   : > { %536 = vrot.lane.b32.xlu0 %v2956_v0, %s2600_s21  ;;  %v3076_v25 = vpop.permute.xlu0 %963 }
 0x106   : > { %572 = vrot.lane.b32.xlu1 %v2942_v56, %s2600_s21 }
 0x107   : > { %v960_v24 = vpop.permute.xlu1 %959 }
 0x108   : > { %660 = vrot.lane.b32.xlu0 %v3024_v18, %s2602_s30 }
 0x10a   : > { %687 = vrot.lane.b32.xlu1 %v3014_v23, %s2602_s30 }
 0x10b   : > { %v962_v20 = vpop.permute.xlu1 %961 }
 0x10c   : > { %1249 = vrot.lane.b32.xlu0 %v2954_v59, %s2601_s28 }
 0x10e   : > { %1251 = vrot.lane.b32.xlu1 %v2986_v17, %s2601_s28 }
 0x110   : > { %1253 = vrot.lane.b32.xlu0 %v2921_v8, %s2601_s28 }
 0x112   : > { %1255 = vrot.lane.b32.xlu1 %v2974_v7, %s2601_s28 }
 0x114   : > { %662 = vrot.lane.b32.xlu0 %v2962_v10, %s2602_s30 }
 0x116   : > { %664 = vrot.lane.b32.xlu1 %v2968_v32, %s2602_s30  ;;  %v3084_v26 = vpop.permute.xlu0 %1106 }
 0x118   : > { %689 = vrot.lane.b32.xlu0 %v2936_v49, %s2602_s30 }
 0x11a   : > { %691 = vrot.lane.b32.xlu1 %v2940_v52, %s2602_s30  ;;  %v3090_v29 = vpop.permute.xlu0 %1110 }
 0x11c   : > { %v966_v27 = vpop.permute.xlu1 %965  ;;  %1257 = vrot.lane.b32.xlu0 %v2929_v21, %s2601_s28 }
 0x11e   : > { %1259 = vrot.lane.b32.xlu1 %v2984_v14, %s2601_s28  ;;  %v3096_v30 = vpop.permute.xlu0 %1114 }
 0x120   : > { %v3098_v31 = vpop.permute.xlu1 %558  ;;  %1261 = vrot.lane.b32.xlu0 %v2914_v3, %s2601_s28 }
 0x122   : > { %1263 = vrot.lane.b32.xlu1 %v2992_v15, %s2601_s28  ;;  %v3104_v33 = vpop.permute.xlu0 %1118 }
 0x124   : > { %v939_v34 = vpop.permute.xlu1 %938  ;;  %666 = vrot.lane.b32.xlu0 %v2976_v11, %s2602_s30 }
 0x125   : > { %v1003_v54 = vsel %vm967_vm13, %v939_v34, %v966_v27  ;;  %v976_v5 = vsel %vm967_vm13, %v966_v27, %v939_v34 }
 0x126   : > { %668 = vrot.lane.b32.xlu1 %v2986_v17, %s2602_s30  ;;  %v3110_v36 = vpop.permute.xlu0 %1122  ;;  %v1031_v19 = vmul.f32 %v3139_v46, %v1003_v54  ;;  %v1032_v27 = vmul.f32 %v3142_v48, %v976_v5  ;;  %v1075_v5 = vmul.f32 %v3145_v53, %v2974_v7 }
 0x128   : > { %v3112_v37 = vpop.permute.xlu1 %1108  ;;  %693 = vrot.lane.b32.xlu0 %v2948_v9, %s2602_s30 }
 0x12a   : > { %695 = vrot.lane.b32.xlu1 %v2954_v59, %s2602_s30  ;;  %v3118_v39 = vpop.permute.xlu0 %1126 }
 0x12c   : > { %v3120_v40 = vpop.permute.xlu1 %1112  ;;  %1265 = vrot.lane.b32.xlu0 %v2942_v56, %s2601_s28 }
 0x12e   : > { %1267 = vrot.lane.b32.xlu1 %v2956_v0, %s2601_s28  ;;  %v933_v2 = vpop.permute.xlu0 %932 }
 0x12f   : > { %v1000_v45 = vsel %vm967_vm13, %v933_v2, %v960_v24  ;;  %v973_v50 = vsel %vm967_vm13, %v960_v24, %v933_v2  ;;  %v1069_v2 = vmul.f32 %v3145_v53, %v2968_v32 }
 0x130   : > { %v3130_v43 = vpop.permute.xlu1 %1116  ;;  %1364 = vrot.lane.b32.xlu0 %v3014_v23, %s2603_s5  ;;  %v1026_v60 = vmul.f32 %v3142_v48, %v973_v50  ;;  %v1025_v62 = vmul.f32 %v3139_v46, %v1000_v45  ;;  %v2245_v50 = vpack.c.bf16 %v1067_v16, %v1065_v13  ;;  %v1074_v13 = vmul.f32 %v3162_v6, %v2921_v8 }
 0x132   : > { %1366 = vrot.lane.b32.xlu1 %v3024_v18, %s2603_s5  ;;  %v935_v51 = vpop.permute.xlu0 %934 }
 0x133   : > { %v1001_v55 = vsel %vm967_vm13, %v935_v51, %v962_v20  ;;  %v974_v58 = vsel %vm967_vm13, %v962_v20, %v935_v51  ;;  %v1627_v20 = vld [vmem:[#allocation10 + $0x18] sm:$0xff]  ;;  %v1071_v51 = vmul.f32 %v3145_v53, %v2976_v11 }
 0x134   : > { %v3149_v57 = vpop.permute.xlu1 %1120  ;;  %670 = vrot.lane.b32.xlu0 %v2974_v7, %s2602_s30  ;;  %v1028_v61 = vmul.f32 %v3142_v48, %v974_v58  ;;  %v1027_v4 = vmul.f32 %v3139_v46, %v1001_v55  ;;  %1931 = vmatprep.mubr.f32.mxu0 %v1627_v20  ;;  %v1068_v58 = vmul.f32 %v3162_v6, %v2940_v52 }
 0x136   : > { %672 = vrot.lane.b32.xlu1 %v2984_v14, %s2602_s30  ;;  %v937_v47 = vpop.permute.xlu0 %936  ;;  %v2237_v63 = vpack.c.bf16 %v1028_v61, %v1026_v60  ;;  %v2239_v12 = vpack.c.bf16 %v1027_v4, %v1025_v62  ;;  %v1070_v60 = vmul.f32 %v3162_v6, %v2948_v9  ;;  %v2249_v62 = vpack.c.bf16 %v1071_v51, %v1069_v2 }
 0x137   : > { %v975_v22 = vsel %vm967_vm13, %v3076_v25, %v937_v47  ;;  %v1002_v1 = vsel %vm967_vm13, %v937_v47, %v3076_v25  ;;  %v1064_v25 = vmul.f32 %v3162_v6, %v3014_v23  ;;  %v1073_v4 = vmul.f32 %v3145_v53, %v2986_v17 }
 0x138   : > { %v3173_v24 = vpop.permute.xlu1 %522  ;;  %v1029_v34 = vmul.f32 %v3139_v46, %v1002_v1  ;;  %v1030_v35 = vmul.f32 %v3142_v48, %v975_v22  ;;  %2238 = vmatprep.subr.bf16.mxu0 %v2237_v63  ;;  %697 = vrot.lane.b32.xlu0 %v2921_v8, %s2602_s30  ;;  %v2251_v63 = vpack.c.bf16 %v1070_v60, %v1068_v58  ;;  %v510_v58 = vld [vmem:[#allocation8] sm:$0x3] }
 0x139   : > { %2240 = vmatpush1.bf16.msra.mxu0 %v2239_v12  ;;  %v2247_v55 = vpack.c.bf16 %v1066_v38, %v1064_v25  ;;  %v1072_v12 = vmul.f32 %v3162_v6, %v2954_v59  ;;  %v1077_v22 = vmul.f32 %v3145_v53, %v2984_v14  ;;  %v1079_v1 = vmul.f32 %v3145_v53, %v2992_v15 }
 0x13a   : > { %699 = vrot.lane.b32.xlu1 %v2929_v21, %s2602_s30  ;;  %v3188_v42 = vpop.permute.xlu0 %524  ;;  %v2241_v44 = vpack.c.bf16 %v1032_v27, %v1030_v35  ;;  %v2243_v45 = vpack.c.bf16 %v1031_v19, %v1029_v34  ;;  %v2253_v19 = vpack.c.bf16 %v1075_v5, %v1073_v4  ;;  %v1076_v34 = vmul.f32 %v3162_v6, %v2929_v21 }
 0x13b   : > { %v2255_v27 = vpack.c.bf16 %v1074_v13, %v1072_v12  ;;  %v1078_v35 = vmul.f32 %v3162_v6, %v2914_v3  ;;  %v2257_v38 = vpack.c.bf16 %v1079_v1, %v1077_v22  ;;  %v1176_v4 = vsel %vm1138_vm14, %v3112_v37, %v3084_v26 }
 0x13c   : > { %v3192_v54 = vpop.permute.xlu1 %1124  ;;  %2242 = vmatprep.subr.bf16.mxu0 %v2241_v44  ;;  %1368 = vrot.lane.b32.xlu0 %v2936_v49, %s2603_s5  ;;  %v1101_v44 = vld [vmem:[#allocation8 + $0xa] sm:$0x3]  ;;  %v1140_v5 = vsel %vm1138_vm14, %v3084_v26, %v3112_v37  ;;  %v1141_v12 = vsel %vm1138_vm14, %v3090_v29, %v3120_v40  ;;  %v3266_v13 = vrot.slane %v510_v58, %v3126_v28 }
 0x13d   : > { %2244 = vmatpush1.bf16.msra.mxu0 %v2243_v45  ;;  %v2259_v45 = vpack.c.bf16 %v1078_v35, %v1076_v34  ;;  %v603_v37 = vsel %vm574_vm15, %v3173_v24, %v3098_v31  ;;  %v1080_v34 = vmul.f32 %v3162_v6, %v2942_v56  ;;  %v1179_v6 = vsel %vm1138_vm14, %v3149_v57, %v3104_v33 }
 0x13e   : > { %1370 = vrot.lane.b32.xlu1 %v2962_v10, %s2603_s5  ;;  %v3202_v61 = vpop.permute.xlu0 %560  ;;  %2246 = vmatprep.subr.bf16.mxu0 %v2245_v50  ;;  %v1177_v50 = vsel %vm1138_vm14, %v3120_v40, %v3090_v29  ;;  %v576_v29 = vsel %vm574_vm15, %v3098_v31, %v3173_v24  ;;  %v1143_v31 = vsel %vm1138_vm14, %v3104_v33, %v3149_v57 }
 0x140   : > { %v3208_v47 = vpop.permute.xlu1 %1128  ;;  %1372 = vrot.lane.b32.xlu0 %v2940_v52, %s2603_s5 }
 0x141   : > { %2248 = vmatpush1.bf16.msra.mxu0 %v2247_v55  ;;  %v3242_v55 = vrot.slane %v1101_v44, %v3128_v41 }
 0x142   : > { %1374 = vrot.lane.b32.xlu1 %v2968_v32, %s2603_s5  ;;  %v3218_v16 = vpop.permute.xlu0 %1130  ;;  %2250 = vmatprep.subr.bf16.mxu0 %v2249_v62  ;;  %v3247_v62 = vrot.slane %v1101_v44, %v3126_v28 }
 0x143   : > { %v3272_v26 = vmul.f32 %v3242_v55, %v1176_v4 }
 0x144   : > { %v527_v20 = vpop.permute.xlu1 %526  ;;  %674 = vrot.lane.b32.xlu0 %v2992_v15, %s2602_s30  ;;  %v3283_v40 = vmul.f32 %v3247_v62, %v1140_v5  ;;  %v3292_v35 = vmul.f32 %v3247_v62, %v1141_v12 }
 0x145   : > { %2252 = vmatpush1.bf16.msra.mxu0 %v2251_v63  ;;  %v3258_v63 = vmul.f32 %v3242_v55, %v1177_v50  ;;  %v624_v50 = vmul.f32 %v3266_v13, %v603_v37 }
 0x146   : > { %676 = vrot.lane.b32.xlu1 %v2956_v0, %s2602_s30  ;;  %v3232_v25 = vpop.permute.xlu0 %1134  ;;  %2254 = vmatprep.subr.bf16.mxu0 %v2253_v19  ;;  %v3269_v19 = vrot.slane %v510_v58, %v3128_v41  ;;  %v577_v58 = vsel %vm574_vm15, %v3202_v61, %v3188_v42 }
 0x148   : > { %v563_v2 = vpop.permute.xlu1 %562  ;;  %701 = vrot.lane.b32.xlu0 %v2914_v3, %s2602_s30 }
 0x149   : > { %2256 = vmatpush1.bf16.msra.mxu0 %v2255_v27  ;;  %v1081_v27 = vmul.f32 %v3145_v53, %v2956_v0  ;;  %v2265_v53 = vpack.c.bf16 %v3258_v63, %v3272_v26  ;;  %v578_v24 = vsel %vm574_vm15, %v563_v2, %v527_v20  ;;  %v605_v4 = vsel %vm574_vm15, %v527_v20, %v563_v2 }
 0x14a   : > { %703 = vrot.lane.b32.xlu1 %v2942_v56, %s2602_s30  ;;  %v1103_v51 = vpop.permute.xlu0 %1102  ;;  %2258 = vmatprep.subr.bf16.mxu0 %v2257_v38  ;;  %v1178_v38 = vsel %vm1138_vm14, %v3130_v43, %v3096_v30  ;;  %v629_v20 = vmul.f32 %v3269_v19, %v578_v24  ;;  %v628_v24 = vmul.f32 %v3266_v13, %v605_v4 }
 0x14c   : > { %v3244_v60 = vpop.permute.xlu1 %1132  ;;  %1376 = vrot.lane.b32.xlu0 %v2948_v9, %s2603_s5 }
 0x14d   : > { %2260 = vmatpush1.bf16.msra.mxu0 %v2259_v45  ;;  %v625_v45 = vmul.f32 %v3269_v19, %v576_v29  ;;  %v1204_v29 = vmul.f32 %v3242_v55, %v1179_v6  ;;  %v627_v6 = vmul.f32 %v3269_v19, %v577_v58 }
 0x14e   : > { %1378 = vrot.lane.b32.xlu1 %v2976_v11, %s2603_s5  ;;  %v557_v22 = vpop.permute.xlu0 %556 }
 0x150   : > { %v3277_v1 = vpop.permute.xlu1 %1136  ;;  %1380 = vrot.lane.b32.xlu0 %v2954_v59, %s2603_s5 }
 0x152   : > { %1382 = vrot.lane.b32.xlu1 %v2986_v17, %s2603_s5  ;;  %v521_v44 = vpop.permute.xlu0 %520 }
 0x153   : > { %v602_v5 = vsel %vm574_vm15, %v521_v44, %v557_v22  ;;  %v575_v12 = vsel %vm574_vm15, %v557_v22, %v521_v44  ;;  %v604_v44 = vsel %vm574_vm15, %v3188_v42, %v3202_v61  ;;  %v2267_v42 = vpack.c.bf16 %v3292_v35, %v3283_v40 }
 0x154   : > { %v1105_v63 = vpop.permute.xlu1 %1104  ;;  %791 = vrot.lane.b32.xlu0 %v3024_v18, %s2604_s7  ;;  %v623_v26 = vmul.f32 %v3269_v19, %v575_v12  ;;  %v622_v37 = vmul.f32 %v3266_v13, %v602_v5  ;;  %v626_v61 = vmul.f32 %v3266_v13, %v604_v44  ;;  %v1181_v40 = vsel %vm1138_vm14, %v3208_v47, %v3118_v39 }
 0x155   : > { %v1139_v33 = vsel %vm1138_vm14, %v1103_v51, %v1105_v63  ;;  %v1175_v57 = vsel %vm1138_vm14, %v1105_v63, %v1103_v51  ;;  %v1202_v51 = vmul.f32 %v3242_v55, %v1178_v38  ;;  %v1203_v38 = vmul.f32 %v3247_v62, %v1143_v31 }
 0x156   : > { %v1195_v2 = vmul.f32 %v3247_v62, %v1139_v33  ;;  %v1196_v22 = vmul.f32 %v3242_v55, %v1175_v57  ;;  %793 = vrot.lane.b32.xlu1 %v2962_v10, %s2604_s7  ;;  %v529_v63 = vpop.permute.xlu0 %528  ;;  %v2173_v12 = vpack.c.bf16 %v625_v45, %v623_v26  ;;  %v2175_v5 = vpack.c.bf16 %v624_v50, %v622_v37 }
 0x157   : > { %v1142_v57 = vsel %vm1138_vm14, %v3096_v30, %v3130_v43  ;;  %v1180_v30 = vsel %vm1138_vm14, %v3192_v54, %v3110_v36  ;;  %v1145_v43 = vsel %vm1138_vm14, %v3118_v39, %v3208_v47  ;;  %v2179_v58 = vpack.c.bf16 %v628_v24, %v626_v61 }
 0x158   : > { %v531_v48 = vpop.permute.xlu1 %530  ;;  %v2261_v33 = vpack.c.bf16 %v1196_v22, %v1081_v27  ;;  %v2263_v46 = vpack.c.bf16 %v1195_v2, %v1080_v34  ;;  %818 = vrot.lane.b32.xlu0 %v3014_v23, %s2604_s7  ;;  %2174 = vmatprep.subr.bf16.mxu1 %v2173_v12  ;;  %v2177_v27 = vpack.c.bf16 %v629_v20, %v627_v6 }
 0x159   : > { %v2269_v34 = vpack.c.bf16 %v1204_v29, %v1202_v51  ;;  %2176 = vmatpush1.bf16.msra.mxu1 %v2175_v5  ;;  %v1144_v39 = vsel %vm1138_vm14, %v3110_v36, %v3192_v54  ;;  %v1201_v20 = vmul.f32 %v3247_v62, %v1142_v57  ;;  %v1206_v36 = vmul.f32 %v3242_v55, %v1180_v30  ;;  %v1232_v5 = vld [vmem:[#allocation8 + $0xc] sm:$0x3] }
 0x15a   : > { %820 = vrot.lane.b32.xlu1 %v2936_v49, %s2604_s7  ;;  %2262 = vmatprep.subr.bf16.mxu0 %v2261_v33  ;;  %v565_v35 = vpop.permute.xlu0 %564  ;;  %v1207_v54 = vmul.f32 %v3247_v62, %v1145_v43  ;;  %v1182_v12 = vsel %vm1138_vm14, %v3244_v60, %v3218_v16  ;;  %v1147_v24 = vsel %vm1138_vm14, %v3232_v25, %v3277_v1 }
 0x15b   : > { %2264 = vmatpush1.bf16.msra.mxu0 %v2263_v46  ;;  %2178 = vmatprep.subr.bf16.mxu1 %v2177_v27  ;;  %v579_v31 = vsel %vm574_vm15, %v565_v35, %v529_v63  ;;  %v606_v45 = vsel %vm574_vm15, %v529_v63, %v565_v35  ;;  %v1208_v46 = vmul.f32 %v3242_v55, %v1181_v40 }
 0x15c   : > { %v567_v50 = vpop.permute.xlu1 %566  ;;  %2266 = vmatprep.subr.bf16.mxu0 %v2265_v53  ;;  %v630_v4 = vmul.f32 %v3266_v13, %v606_v45  ;;  %v631_v26 = vmul.f32 %v3269_v19, %v579_v31  ;;  %1384 = vrot.lane.b32.xlu0 %v2921_v8, %s2603_s5  ;;  %v1205_v63 = vmul.f32 %v3247_v62, %v1144_v39 }
 0x15d   : > { %v580_v37 = vsel %vm574_vm15, %v567_v50, %v531_v48  ;;  %v607_v29 = vsel %vm574_vm15, %v531_v48, %v567_v50  ;;  %v1183_v48 = vsel %vm1138_vm14, %v3277_v1, %v3232_v25  ;;  %2180 = vmatpush1.bf16.msra.mxu1 %v2179_v58  ;;  %v2271_v6 = vpack.c.bf16 %v1203_v38, %v1201_v20 }
 0x15e   : > { %v632_v47 = vmul.f32 %v3266_v13, %v607_v29  ;;  %v633_v53 = vmul.f32 %v3269_v19, %v580_v37  ;;  %1386 = vrot.lane.b32.xlu1 %v2974_v7, %s2603_s5  ;;  %v1234_v2 = vpop.permute.xlu0 %1233  ;;  %v1212_v33 = vmul.f32 %v3242_v55, %v1183_v48  ;;  %v2273_v57 = vpack.c.bf16 %v1208_v46, %v1206_v36 }
 0x15f   : > { %2268 = vmatpush1.bf16.msra.mxu0 %v2267_v42  ;;  %v1146_v61 = vsel %vm1138_vm14, %v3218_v16, %v3244_v60  ;;  %v1210_v38 = vmul.f32 %v3242_v55, %v1182_v12  ;;  %v3393_v27 = vrot.slane %v1232_v5, %v3128_v41  ;;  %v2275_v1 = vpack.c.bf16 %v1207_v54, %v1205_v63 }
 0x160   : > { %v1236_v22 = vpop.permute.xlu1 %1235  ;;  %2270 = vmatprep.subr.bf16.mxu0 %v2269_v34  ;;  %v2181_v51 = vpack.c.bf16 %v633_v53, %v631_v26  ;;  %v2183_v44 = vpack.c.bf16 %v632_v47, %v630_v4  ;;  %1388 = vrot.lane.b32.xlu0 %v2929_v21, %s2603_s5  ;;  %v1211_v34 = vmul.f32 %v3247_v62, %v1147_v24 }
 0x161   : > { %v1306_v30 = vsel %vm1269_vm0, %v1236_v22, %v1234_v2  ;;  %v3402_v16 = vrot.slane %v1232_v5, %v3126_v28  ;;  %v2277_v60 = vpack.c.bf16 %v1212_v33, %v1210_v38  ;;  %v1209_v35 = vmul.f32 %v3247_v62, %v1146_v61 }
 0x162   : > { %1390 = vrot.lane.b32.xlu1 %v2984_v14, %s2603_s5  ;;  %2182 = vmatprep.subr.bf16.mxu1 %v2181_v51  ;;  %v1238_v42 = vpop.permute.xlu0 %1237  ;;  %v1270_v31 = vsel %vm1269_vm0, %v1234_v2, %v1236_v22  ;;  %v1327_v50 = vmul.f32 %v3393_v27, %v1306_v30 }
 0x163   : > { %2184 = vmatpush1.bf16.msra.mxu1 %v2183_v44  ;;  %2272 = vmatpush1.bf16.msra.mxu0 %v2271_v6  ;;  %v2279_v26 = vpack.c.bf16 %v1211_v34, %v1209_v35  ;;  %v1326_v37 = vmul.f32 %v3402_v16, %v1270_v31  ;;  %v659_v34 = vld [vmem:[#allocation8 + $0x2] sm:$0x3] }
 0x164   : > { %v1240_v25 = vpop.permute.xlu1 %1239  ;;  %2274 = vmatprep.subr.bf16.mxu0 %v2273_v57  ;;  %795 = vrot.lane.b32.xlu0 %v2968_v32, %s2604_s7 }
 0x165   : > { %v1271_v43 = vsel %vm1269_vm0, %v1238_v42, %v1240_v25  ;;  %v1307_v40 = vsel %vm1269_vm0, %v1240_v25, %v1238_v42 }
 0x166   : > { %v1329_v55 = vmul.f32 %v3393_v27, %v1307_v40  ;;  %797 = vrot.lane.b32.xlu1 %v2976_v11, %s2604_s7  ;;  %v533_v45 = vpop.permute.xlu0 %532  ;;  %v1328_v58 = vmul.f32 %v3402_v16, %v1271_v43 }
 0x167   : > { %2276 = vmatpush1.bf16.msra.mxu0 %v2275_v1 }
 0x168   : > { %v535_v4 = vpop.permute.xlu1 %534  ;;  %2278 = vmatprep.subr.bf16.mxu0 %v2277_v60  ;;  %822 = vrot.lane.b32.xlu0 %v2940_v52, %s2604_s7  ;;  %v2281_v62 = vpack.c.bf16 %v1329_v55, %v1327_v50  ;;  %v2283_v53 = vpack.c.bf16 %v1328_v58, %v1326_v37  ;;  %v3449_v55 = vrot.slane %v659_v34, %v3126_v28 }
 0x169   : > { %v3452_v60 = vrot.slane %v659_v34, %v3128_v41 }
 0x16a   : > { %824 = vrot.lane.b32.xlu1 %v2948_v9, %s2604_s7  ;;  %v569_v29 = vpop.permute.xlu0 %568 }
 0x16b   : > { %2280 = vmatpush1.bf16.msra.mxu0 %v2279_v26  ;;  %v581_v39 = vsel %vm574_vm15, %v569_v29, %v533_v45  ;;  %v608_v46 = vsel %vm574_vm15, %v533_v45, %v569_v29 }
 0x16c   : > { %v571_v47 = vpop.permute.xlu1 %570  ;;  %2282 = vmatprep.subr.bf16.mxu0 %v2281_v62  ;;  %v634_v20 = vmul.f32 %v3266_v13, %v608_v46  ;;  %v635_v48 = vmul.f32 %v3269_v19, %v581_v39  ;;  %1392 = vrot.lane.b32.xlu0 %v2914_v3, %s2603_s5 }
 0x16d   : > { %v582_v2 = vsel %vm574_vm15, %v571_v47, %v535_v4  ;;  %v609_v36 = vsel %vm574_vm15, %v535_v4, %v571_v47 }
 0x16e   : > { %v636_v54 = vmul.f32 %v3266_v13, %v609_v36  ;;  %v637_v22 = vmul.f32 %v3269_v19, %v582_v2  ;;  %1394 = vrot.lane.b32.xlu1 %v2992_v15, %s2603_s5  ;;  %v1242_v51 = vpop.permute.xlu0 %1241 }
 0x16f   : > { %2284 = vmatpush1.bf16.msra.mxu0 %v2283_v53 }
 0x170   : > { %v1244_v44 = vpop.permute.xlu1 %1243  ;;  %v2185_v63 = vpack.c.bf16 %v637_v22, %v635_v48  ;;  %v2187_v12 = vpack.c.bf16 %v636_v54, %v634_v20  ;;  %1396 = vrot.lane.b32.xlu0 %v2942_v56, %s2603_s5 }
 0x171   : > { %v1272_v3 = vsel %vm1269_vm0, %v1242_v51, %v1244_v44  ;;  %v1308_v5 = vsel %vm1269_vm0, %v1244_v44, %v1242_v51 }
 0x172   : > { %1398 = vrot.lane.b32.xlu1 %v2956_v0, %s2603_s5  ;;  %2186 = vmatprep.subr.bf16.mxu1 %v2185_v63  ;;  %v1246_v6 = vpop.permute.xlu0 %1245  ;;  %v1330_v42 = vmul.f32 %v3402_v16, %v1272_v3  ;;  %v1331_v61 = vmul.f32 %v3393_v27, %v1308_v5  ;;  %v3484_v3 = vld [vmem:[#allocation2 + $0x70] sm:$0xff] }
 0x173   : > { %2188 = vmatpush1.bf16.msra.mxu1 %v2187_v12 }
 0x174   : > { %v1248_v24 = vpop.permute.xlu1 %1247  ;;  %799 = vrot.lane.b32.xlu0 %v2986_v17, %s2604_s7 }
 0x175   : > { %v1273_v33 = vsel %vm1269_vm0, %v1246_v6, %v1248_v24  ;;  %v1309_v57 = vsel %vm1269_vm0, %v1248_v24, %v1246_v6 }
 0x176   : > { %v1332_v38 = vmul.f32 %v3402_v16, %v1273_v33  ;;  %v1333_v25 = vmul.f32 %v3393_v27, %v1309_v57  ;;  %801 = vrot.lane.b32.xlu1 %v2974_v7, %s2604_s7  ;;  %v537_v1 = vpop.permute.xlu0 %536 }
 0x178   : > { %v573_v30 = vpop.permute.xlu1 %572  ;;  %v2285_v43 = vpack.c.bf16 %v1333_v25, %v1331_v61  ;;  %v2287_v40 = vpack.c.bf16 %v1332_v38, %v1330_v42  ;;  %826 = vrot.lane.b32.xlu0 %v2954_v59, %s2604_s7 }
 0x179   : > { %v583_v35 = vsel %vm574_vm15, %v573_v30, %v537_v1  ;;  %v610_v31 = vsel %vm574_vm15, %v537_v1, %v573_v30 }
 0x17a   : > { %828 = vrot.lane.b32.xlu1 %v2921_v8, %s2604_s7  ;;  %2286 = vmatprep.subr.bf16.mxu0 %v2285_v43  ;;  %v661_v45 = vpop.permute.xlu0 %660  ;;  %v638_v8 = vmul.f32 %v3266_v13, %v610_v31  ;;  %v639_v26 = vmul.f32 %v3269_v19, %v583_v35 }
 0x17b   : > { %2288 = vmatpush1.bf16.msra.mxu0 %v2287_v40 }
 0x17c   : > { %v688_v50 = vpop.permute.xlu1 %687  ;;  %1495 = vrot.lane.b32.xlu0 %v3014_v23, %s2605_s8 }
 0x17d   : > { %v706_v58 = vsel %vm705_vm1, %v688_v50, %v661_v45  ;;  %v733_v4 = vsel %vm705_vm1, %v661_v45, %v688_v50 }
 0x17e   : > { %v753_v37 = vmul.f32 %v3449_v55, %v733_v4  ;;  %v754_v62 = vmul.f32 %v3452_v60, %v706_v58  ;;  %1497 = vrot.lane.b32.xlu1 %v3024_v18, %s2605_s8  ;;  %v1250_v29 = vpop.permute.xlu0 %1249 }
 0x180   : > { %v1252_v39 = vpop.permute.xlu1 %1251  ;;  %v2189_v46 = vpack.c.bf16 %v754_v62, %v639_v26  ;;  %v2191_v47 = vpack.c.bf16 %v753_v37, %v638_v8  ;;  %1499 = vrot.lane.b32.xlu0 %v2936_v49, %s2605_s8 }
 0x181   : > { %v1274_v13 = vsel %vm1269_vm0, %v1250_v29, %v1252_v39  ;;  %v1310_v19 = vsel %vm1269_vm0, %v1252_v39, %v1250_v29 }
 0x182   : > { %1501 = vrot.lane.b32.xlu1 %v2962_v10, %s2605_s8  ;;  %2190 = vmatprep.subr.bf16.mxu1 %v2189_v46  ;;  %v1254_v53 = vpop.permute.xlu0 %1253  ;;  %v1334_v49 = vmul.f32 %v3402_v16, %v1274_v13  ;;  %v1335_v36 = vmul.f32 %v3393_v27, %v1310_v19  ;;  %v1363_v19 = vld [vmem:[#allocation8 + $0xe] sm:$0x3] }
 0x183   : > { %2192 = vmatpush1.bf16.msra.mxu1 %v2191_v47 }
 0x184   : > { %v1256_v20 = vpop.permute.xlu1 %1255  ;;  %803 = vrot.lane.b32.xlu0 %v2984_v14, %s2604_s7 }
 0x185   : > { %v1275_v48 = vsel %vm1269_vm0, %v1254_v53, %v1256_v20  ;;  %v1311_v2 = vsel %vm1269_vm0, %v1256_v20, %v1254_v53 }
 0x186   : > { %v1336_v54 = vmul.f32 %v3402_v16, %v1275_v48  ;;  %v1337_v22 = vmul.f32 %v3393_v27, %v1311_v2  ;;  %805 = vrot.lane.b32.xlu1 %v2992_v15, %s2604_s7  ;;  %v663_v51 = vpop.permute.xlu0 %662  ;;  %v2422_v2 = vld [vmem:[#allocation2 + $0x50] sm:$0xff] }
 0x188   : > { %v665_v44 = vpop.permute.xlu1 %664  ;;  %v2289_v63 = vpack.c.bf16 %v1337_v22, %v1335_v36  ;;  %v2291_v12 = vpack.c.bf16 %v1336_v54, %v1334_v49  ;;  %830 = vrot.lane.b32.xlu0 %v2929_v21, %s2604_s7  ;;  %v3539_v49 = vrot.slane %v1363_v19, %v3128_v41 }
 0x18a   : > { %832 = vrot.lane.b32.xlu1 %v3484_v3, %s2604_s7  ;;  %2290 = vmatprep.subr.bf16.mxu0 %v2289_v63  ;;  %v690_v14 = vpop.permute.xlu0 %689 }
 0x18b   : > { %2292 = vmatpush1.bf16.msra.mxu0 %v2291_v12  ;;  %v707_v5 = vsel %vm705_vm1, %v690_v14, %v663_v51  ;;  %v734_v6 = vsel %vm705_vm1, %v663_v51, %v690_v14 }
 0x18c   : > { %v692_v15 = vpop.permute.xlu1 %691  ;;  %v755_v24 = vmul.f32 %v3449_v55, %v734_v6  ;;  %v756_v33 = vmul.f32 %v3452_v60, %v707_v5  ;;  %1503 = vrot.lane.b32.xlu0 %v2940_v52, %s2605_s8 }
 0x18d   : > { %v708_v57 = vsel %vm705_vm1, %v692_v15, %v665_v44  ;;  %v735_v21 = vsel %vm705_vm1, %v665_v44, %v692_v15 }
 0x18e   : > { %v757_v42 = vmul.f32 %v3449_v55, %v735_v21  ;;  %v758_v61 = vmul.f32 %v3452_v60, %v708_v57  ;;  %1505 = vrot.lane.b32.xlu1 %v2968_v32, %s2605_s8  ;;  %v1258_v38 = vpop.permute.xlu0 %1257  ;;  %v2424_v57 = vld [vmem:[#allocation2 + $0x20] sm:$0xff] }
 0x190   : > { %v1260_v25 = vpop.permute.xlu1 %1259  ;;  %v2193_v1 = vpack.c.bf16 %v758_v61, %v756_v33  ;;  %v2195_v34 = vpack.c.bf16 %v757_v42, %v755_v24  ;;  %1507 = vrot.lane.b32.xlu0 %v2948_v9, %s2605_s8  ;;  %v2423_v33 = vld [vmem:[#allocation2 + $0x10] sm:$0xff] }
 0x191   : > { %v1276_v52 = vsel %vm1269_vm0, %v1258_v38, %v1260_v25  ;;  %v1312_v30 = vsel %vm1269_vm0, %v1260_v25, %v1258_v38 }
 0x192   : > { %1509 = vrot.lane.b32.xlu1 %v2976_v11, %s2605_s8  ;;  %2194 = vmatprep.subr.bf16.mxu1 %v2193_v1  ;;  %v1262_v43 = vpop.permute.xlu0 %1261  ;;  %v1338_v9 = vmul.f32 %v3402_v16, %v1276_v52  ;;  %v1339_v45 = vmul.f32 %v3393_v27, %v1312_v30  ;;  %v2425_v1 = vld [vmem:[#allocation2 + $0x60] sm:$0xff]  ;;  %v2426_v30 = vld [vmem:[#allocation2 + $0x68] sm:$0xff] }
 0x193   : > { %2196 = vmatpush1.bf16.msra.mxu1 %v2195_v34 }
 0x194   : > { %v1264_v40 = vpop.permute.xlu1 %1263  ;;  %807 = vrot.lane.b32.xlu0 %v2956_v0, %s2604_s7 }
 0x195   : > { %v1277_v35 = vsel %vm1269_vm0, %v1262_v43, %v1264_v40  ;;  %v1313_v31 = vsel %vm1269_vm0, %v1264_v40, %v1262_v43 }
 0x196   : > { %v1340_v11 = vmul.f32 %v3402_v16, %v1277_v35  ;;  %v1341_v50 = vmul.f32 %v3393_v27, %v1313_v31  ;;  %834 = vrot.lane.b32.xlu1 %v2942_v56, %s2604_s7  ;;  %v667_v58 = vpop.permute.xlu0 %666 }
 0x198   : > { %v669_v4 = vpop.permute.xlu1 %668  ;;  %v2293_v8 = vpack.c.bf16 %v1341_v50, %v1339_v45  ;;  %v2295_v26 = vpack.c.bf16 %v1340_v11, %v1338_v9  ;;  %922 = vrot.lane.b32.xlu0 %v3024_v18, %s2598_s22  ;;  %v2427_v45 = vld [vmem:[#allocation2 + $0x78] sm:$0xff] }
 0x19a   : > { %949 = vrot.lane.b32.xlu1 %v3014_v23, %s2598_s22  ;;  %2294 = vmatprep.subr.bf16.mxu0 %v2293_v8  ;;  %v694_v0 = vpop.permute.xlu0 %693 }
 0x19b   : > { %2296 = vmatpush1.bf16.msra.mxu0 %v2295_v26  ;;  %v709_v37 = vsel %vm705_vm1, %v694_v0, %v667_v58  ;;  %v736_v62 = vsel %vm705_vm1, %v667_v58, %v694_v0 }
 0x19c   : > { %v696_v29 = vpop.permute.xlu1 %695  ;;  %v759_v56 = vmul.f32 %v3449_v55, %v736_v62  ;;  %v760_v39 = vmul.f32 %v3452_v60, %v709_v37  ;;  %1511 = vrot.lane.b32.xlu0 %v2954_v59, %s2605_s8  ;;  %v3536_v59 = vrot.slane %v1363_v19, %v3126_v28  ;;  %v2428_v37 = vld [vmem:[#allocation2 + $0x38] sm:$0xff]  ;;  %v2431_v19 = vld [vmem:[#allocation2 + $0x40] sm:$0xff] }
 0x19d   : > { %v710_v46 = vsel %vm705_vm1, %v696_v29, %v669_v4  ;;  %v737_v47 = vsel %vm705_vm1, %v669_v4, %v696_v29  ;;  %v1625_v4 = vld [vmem:[#allocation10 + $0x8] sm:$0xff] }
 0x19e   : > { %v761_v23 = vmul.f32 %v3449_v55, %v737_v47  ;;  %v762_v18 = vmul.f32 %v3452_v60, %v710_v46  ;;  %1513 = vrot.lane.b32.xlu1 %v2986_v17, %s2605_s8  ;;  %v1266_v13 = vpop.permute.xlu0 %1265  ;;  %1860 = vmatprep.mubr.f32.mxu1 %v1625_v4 }
 0x1a0   : > { %v1268_v53 = vpop.permute.xlu1 %1267  ;;  %v2197_v20 = vpack.c.bf16 %v762_v18, %v760_v39  ;;  %v2199_v48 = vpack.c.bf16 %v761_v23, %v759_v56  ;;  %1515 = vrot.lane.b32.xlu0 %v2422_v2, %s2605_s8  ;;  %v2429_v39 = vld [vmem:[#allocation2 + $0x48] sm:$0xff] }
 0x1a1   : > { %v1278_v17 = vsel %vm1269_vm0, %v1266_v13, %v1268_v53  ;;  %v1314_v36 = vsel %vm1269_vm0, %v1268_v53, %v1266_v13  ;;  %v2430_v13 = vld [vmem:[#allocation2 + $0x30] sm:$0xff] }
 0x1a2   : > { %1517 = vrot.lane.b32.xlu1 %v2974_v7, %s2605_s8  ;;  %2198 = vmatprep.subr.bf16.mxu1 %v2197_v20  ;;  %v1365_v54 = vpop.permute.xlu0 %1364  ;;  %v1342_v7 = vmul.f32 %v3402_v16, %v1278_v17  ;;  %v1343_v63 = vmul.f32 %v3393_v27, %v1314_v36  ;;  %v1626_v27 = vld [vmem:[#allocation10 + $0x10] sm:$0xff] }
 0x1a3   : > { %2200 = vmatpush1.bf16.msra.mxu1 %v2199_v48 }
 0x1a4   : > { %v1367_v22 = vpop.permute.xlu1 %1366  ;;  %924 = vrot.lane.b32.xlu0 %v2962_v10, %s2598_s22 }
 0x1a5   : > { %v1401_v51 = vsel %vm1400_vm2, %v1365_v54, %v1367_v22  ;;  %v1437_v44 = vsel %vm1400_vm2, %v1367_v22, %v1365_v54 }
 0x1a6   : > { %v1457_v12 = vmul.f32 %v3536_v59, %v1401_v51  ;;  %v1458_v14 = vmul.f32 %v3539_v49, %v1437_v44  ;;  %926 = vrot.lane.b32.xlu1 %v2968_v32, %s2598_s22  ;;  %v671_v5 = vpop.permute.xlu0 %670  ;;  %v2432_v51 = vld [vmem:[#allocation2 + $0x80] sm:$0xff] }
 0x1a8   : > { %v673_v6 = vpop.permute.xlu1 %672  ;;  %v2297_v15 = vpack.c.bf16 %v1458_v14, %v1343_v63  ;;  %v2299_v24 = vpack.c.bf16 %v1457_v12, %v1342_v7  ;;  %951 = vrot.lane.b32.xlu0 %v2423_v33, %s2598_s22  ;;  %v2433_v63 = vld [vmem:[#allocation2 + $0x88] sm:$0xff] }
 0x1aa   : > { %953 = vrot.lane.b32.xlu1 %v2424_v57, %s2598_s22  ;;  %2298 = vmatprep.subr.bf16.mxu0 %v2297_v15  ;;  %v698_v10 = vpop.permute.xlu0 %697 }
 0x1ab   : > { %2300 = vmatpush1.bf16.msra.mxu0 %v2299_v24  ;;  %v711_v16 = vsel %vm705_vm1, %v698_v10, %v671_v5  ;;  %v738_v21 = vsel %vm705_vm1, %v671_v5, %v698_v10 }
 0x1ac   : > { %v700_v42 = vpop.permute.xlu1 %699  ;;  %v763_v32 = vmul.f32 %v3449_v55, %v738_v21  ;;  %v764_v61 = vmul.f32 %v3452_v60, %v711_v16  ;;  %1519 = vrot.lane.b32.xlu0 %v2425_v1, %s2605_s8 }
 0x1ad   : > { %v712_v38 = vsel %vm705_vm1, %v700_v42, %v673_v6  ;;  %v739_v25 = vsel %vm705_vm1, %v673_v6, %v700_v42  ;;  %v790_v42 = vld [vmem:[#allocation8 + $0x4] sm:$0x3] }
 0x1ae   : > { %v765_v34 = vmul.f32 %v3449_v55, %v739_v25  ;;  %v766_v52 = vmul.f32 %v3452_v60, %v712_v38  ;;  %1521 = vrot.lane.b32.xlu1 %v2426_v30, %s2605_s8  ;;  %1932 = vmatmul.mubr.f32.vlgmr.msra.gmra.mrb[0].mxu0 %v1626_v27  ;;  %v1369_v43 = vpop.permute.xlu0 %1368  ;;  %v3599_v1 = vrot.slane %v790_v42, %v3126_v28 }
 0x1b0   : > { %v1371_v40 = vpop.permute.xlu1 %1370  ;;  %v2201_v35 = vpack.c.bf16 %v766_v52, %v764_v61  ;;  %v2203_v31 = vpack.c.bf16 %v765_v34, %v763_v32  ;;  %1523 = vrot.lane.b32.xlu0 %v3484_v3, %s2605_s8  ;;  %v1629_v3 = vld [vmem:[#allocation10 + $0x28] sm:$0xff]  ;;  %v3602_v34 = vrot.slane %v790_v42, %v3128_v41 }
 0x1b1   : > { %v1402_v9 = vsel %vm1400_vm2, %v1369_v43, %v1371_v40  ;;  %v1438_v11 = vsel %vm1400_vm2, %v1371_v40, %v1369_v43  ;;  %2165 = vmatprep.mubr.msk.f32.mxu0 %vm1792_vm3, %v1629_v3 }
 0x1b2   : > { %1525 = vrot.lane.b32.xlu1 %v2427_v45, %s2605_s8  ;;  %2202 = vmatprep.subr.bf16.mxu1 %v2201_v35  ;;  %v1373_v50 = vpop.permute.xlu0 %1372  ;;  %v1459_v8 = vmul.f32 %v3536_v59, %v1402_v9  ;;  %v1460_v62 = vmul.f32 %v3539_v49, %v1438_v11 }
 0x1b3   : > { %2204 = vmatpush1.bf16.msra.mxu1 %v2203_v31 }
 0x1b4   : > { %v1375_v58 = vpop.permute.xlu1 %1374  ;;  %928 = vrot.lane.b32.xlu0 %v2428_v37, %s2598_s22 }
 0x1b5   : > { %v1403_v26 = vsel %vm1400_vm2, %v1373_v50, %v1375_v58  ;;  %v1439_v0 = vsel %vm1400_vm2, %v1375_v58, %v1373_v50 }
 0x1b6   : > { %v1461_v29 = vmul.f32 %v3536_v59, %v1403_v26  ;;  %v1462_v56 = vmul.f32 %v3539_v49, %v1439_v0  ;;  %930 = vrot.lane.b32.xlu1 %v2429_v39, %s2598_s22  ;;  %v675_v46 = vpop.permute.xlu0 %674 }
 0x1b8   : > { %v2303_v47 = vpack.c.bf16 %v1461_v29, %v1459_v8  ;;  %v677_v23 = vpop.permute.xlu1 %676  ;;  %v2301_v18 = vpack.c.bf16 %v1462_v56, %v1460_v62  ;;  %955 = vrot.lane.b32.xlu0 %v2430_v13, %s2598_s22 }
 0x1ba   : > { %957 = vrot.lane.b32.xlu1 %v2431_v19, %s2598_s22  ;;  %2302 = vmatprep.subr.bf16.mxu0 %v2301_v18  ;;  %v702_v53 = vpop.permute.xlu0 %701  ;;  %s2606_s22 = smov [#allocation11]  }
 0x1bb   : > { %2304 = vmatpush1.bf16.msra.mxu0 %v2303_v47  ;;  %v713_v20 = vsel %vm705_vm1, %v702_v53, %v675_v46  ;;  %v740_v48 = vsel %vm705_vm1, %v675_v46, %v702_v53  ;;  %s2524_s24 = sshll.u32 %s2606_s22, 4  ;;  %s2525_s24 = int_to_ptr.vmem [resolvable:$false] %s2524_s24 }
 0x1bc   : > { %v704_v2 = vpop.permute.xlu1 %703  ;;  %v767_v17 = vmul.f32 %v3449_v55, %v740_v48  ;;  %v768_v36 = vmul.f32 %v3452_v60, %v713_v20  ;;  %1527 = vrot.lane.b32.xlu0 %v2432_v51, %s2605_s8  ;;  %s2526_s21 = scalar_lea.vmem %s2525_s24, 512  ;;  %p2527_p7 = scmp.lt.s32.totalorder %s3725_s29, %s2525_s24 }
 0x1bd   : > { %v714_v54 = vsel %vm705_vm1, %v704_v2, %v677_v23  ;;  %v741_v22 = vsel %vm705_vm1, %v677_v23, %v704_v2  ;;  %p2528_p9 = scmp.lt.s32.totalorder %s2526_s21, %s2520_s26 }
 0x1be   : > { %v769_v44 = vmul.f32 %v3449_v55, %v741_v22  ;;  %v770_v7 = vmul.f32 %v3452_v60, %v714_v54  ;;  %1529 = vrot.lane.b32.xlu1 %v2433_v63, %s2605_s8  ;;  %v1377_v12 = vpop.permute.xlu0 %1376 }
 0x1bf   : > { %p2529_p12 = por %p2528_p9, %p2527_p7 }
 0x1c0   : > { %v1379_v14 = vpop.permute.xlu1 %1378  ;;  %v2205_v5 = vpack.c.bf16 %v770_v7, %v768_v36  ;;  %v2207_v6 = vpack.c.bf16 %v769_v44, %v767_v17 }
 0x1c1   : > { %v1404_v15 = vsel %vm1400_vm2, %v1377_v12, %v1379_v14  ;;  %v1440_v24 = vsel %vm1400_vm2, %v1379_v14, %v1377_v12  ;;  %p2530_p2 = pnand %p2529_p12, %p2523_p3 }
 0x1c2   : > { %2206 = vmatprep.subr.bf16.mxu1 %v2205_v5  ;;  %v1381_v33 = vpop.permute.xlu0 %1380  ;;  %v1463_v60 = vmul.f32 %v3536_v59, %v1404_v15  ;;  %v1464_v27 = vmul.f32 %v3539_v49, %v1440_v24 }
 0x1c3   : > { %2208 = vmatpush1.bf16.msra.mxu1 %v2207_v6 }
 0x1c4   : > { %v1383_v57 = vpop.permute.xlu1 %1382 }
 0x1c5   : > { %v1405_v10 = vsel %vm1400_vm2, %v1381_v33, %v1383_v57  ;;  %v1441_v55 = vsel %vm1400_vm2, %v1383_v57, %v1381_v33 }
 0x1c6   : > { %v1465_v16 = vmul.f32 %v3536_v59, %v1405_v10  ;;  %v1466_v21 = vmul.f32 %v3539_v49, %v1441_v55  ;;  %v792_v32 = vpop.permute.xlu0 %791 }
 0x1c8   : > { %v2307_v61 = vpack.c.bf16 %v1465_v16, %v1463_v60  ;;  %v794_v38 = vpop.permute.xlu1 %793  ;;  %v2305_v25 = vpack.c.bf16 %v1466_v21, %v1464_v27 }
 0x1ca   : > { %2306 = vmatprep.subr.bf16.mxu0 %v2305_v25  ;;  %v819_v52 = vpop.permute.xlu0 %818 }
 0x1cb   : > { %2308 = vmatpush1.bf16.msra.mxu0 %v2307_v61  ;;  %v837_v30 = vsel %vm836_vm4, %v819_v52, %v792_v32  ;;  %v864_v43 = vsel %vm836_vm4, %v792_v32, %v819_v52 }
 0x1cc   : > { %v821_v40 = vpop.permute.xlu1 %820  ;;  %v884_v35 = vmul.f32 %v3599_v1, %v864_v43  ;;  %v885_v31 = vmul.f32 %v3602_v34, %v837_v30 }
 0x1cd   : > { %v838_v9 = vsel %vm836_vm4, %v821_v40, %v794_v38  ;;  %v865_v45 = vsel %vm836_vm4, %v794_v38, %v821_v40 }
 0x1ce   : > { %v886_v11 = vmul.f32 %v3599_v1, %v865_v45  ;;  %v887_v50 = vmul.f32 %v3602_v34, %v838_v9  ;;  %v1385_v58 = vpop.permute.xlu0 %1384  ;;  %v1494_v45 = vld [vmem:[#allocation8 + $0x10] sm:$0x3] }
 0x1d0   : > { %v1387_v4 = vpop.permute.xlu1 %1386  ;;  %v2209_v8 = vpack.c.bf16 %v887_v50, %v885_v31  ;;  %v2211_v26 = vpack.c.bf16 %v886_v11, %v884_v35 }
 0x1d1   : > { %v1406_v0 = vsel %vm1400_vm2, %v1385_v58, %v1387_v4  ;;  %v1442_v37 = vsel %vm1400_vm2, %v1387_v4, %v1385_v58  ;;  %v3645_v4 = vrot.slane %v1494_v45, %v3126_v28 }
 0x1d2   : > { %2210 = vmatprep.subr.bf16.mxu1 %v2209_v8  ;;  %v1389_v3 = vpop.permute.xlu0 %1388  ;;  %v1467_v39 = vmul.f32 %v3536_v59, %v1406_v0  ;;  %v1468_v46 = vmul.f32 %v3539_v49, %v1442_v37  ;;  %v3648_v8 = vrot.slane %v1494_v45, %v3128_v41 }
 0x1d3   : > { %2212 = vmatpush1.bf16.msra.mxu1 %v2211_v26 }
 0x1d4   : > { %v1391_v62 = vpop.permute.xlu1 %1390 }
 0x1d5   : > { %v1407_v29 = vsel %vm1400_vm2, %v1389_v3, %v1391_v62  ;;  %v1443_v56 = vsel %vm1400_vm2, %v1391_v62, %v1389_v3 }
 0x1d6   : > { %v1469_v47 = vmul.f32 %v3536_v59, %v1407_v29  ;;  %v1470_v23 = vmul.f32 %v3539_v49, %v1443_v56  ;;  %v796_v18 = vpop.permute.xlu0 %795 }
 0x1d8   : > { %v2311_v13 = vpack.c.bf16 %v1469_v47, %v1467_v39  ;;  %v798_v19 = vpop.permute.xlu1 %797  ;;  %v2309_v53 = vpack.c.bf16 %v1470_v23, %v1468_v46 }
 0x1da   : > { %2310 = vmatprep.subr.bf16.mxu0 %v2309_v53  ;;  %v823_v20 = vpop.permute.xlu0 %822 }
 0x1db   : > { %2312 = vmatpush1.bf16.msra.mxu0 %v2311_v13  ;;  %v839_v48 = vsel %vm836_vm4, %v823_v20, %v796_v18  ;;  %v866_v2 = vsel %vm836_vm4, %v796_v18, %v823_v20 }
 0x1dc   : > { %v825_v17 = vpop.permute.xlu1 %824  ;;  %v888_v36 = vmul.f32 %v3599_v1, %v866_v2  ;;  %v889_v54 = vmul.f32 %v3602_v34, %v839_v48 }
 0x1dd   : > { %v840_v22 = vsel %vm836_vm4, %v825_v17, %v798_v19  ;;  %v867_v51 = vsel %vm836_vm4, %v798_v19, %v825_v17 }
 0x1de   : > { %v890_v44 = vmul.f32 %v3599_v1, %v867_v51  ;;  %v891_v7 = vmul.f32 %v3602_v34, %v840_v22  ;;  %v1393_v63 = vpop.permute.xlu0 %1392 }
 0x1e0   : > { %v1395_v12 = vpop.permute.xlu1 %1394  ;;  %v2213_v14 = vpack.c.bf16 %v891_v7, %v889_v54  ;;  %v2215_v5 = vpack.c.bf16 %v890_v44, %v888_v36 }
 0x1e1   : > { %v1408_v6 = vsel %vm1400_vm2, %v1393_v63, %v1395_v12  ;;  %v1444_v15 = vsel %vm1400_vm2, %v1395_v12, %v1393_v63 }
 0x1e2   : > { %v1471_v24 = vmul.f32 %v3536_v59, %v1408_v6  ;;  %v1472_v33 = vmul.f32 %v3539_v49, %v1444_v15  ;;  %2214 = vmatprep.subr.bf16.mxu1 %v2213_v14  ;;  %v1397_v57 = vpop.permute.xlu0 %1396 }
 0x1e3   : > { %2216 = vmatpush1.bf16.msra.mxu1 %v2215_v5 }
 0x1e4   : > { %v1399_v10 = vpop.permute.xlu1 %1398 }
 0x1e5   : > { %v1409_v55 = vsel %vm1400_vm2, %v1397_v57, %v1399_v10  ;;  %v1445_v60 = vsel %vm1400_vm2, %v1399_v10, %v1397_v57 }
 0x1e6   : > { %v1473_v27 = vmul.f32 %v3536_v59, %v1409_v55  ;;  %v1474_v16 = vmul.f32 %v3539_v49, %v1445_v60  ;;  %v800_v21 = vpop.permute.xlu0 %799 }
 0x1e8   : > { %v2315_v42 = vpack.c.bf16 %v1473_v27, %v1471_v24  ;;  %v802_v32 = vpop.permute.xlu1 %801  ;;  %v2313_v61 = vpack.c.bf16 %v1474_v16, %v1472_v33 }
 0x1ea   : > { %2314 = vmatprep.subr.bf16.mxu0 %v2313_v61  ;;  %v827_v38 = vpop.permute.xlu0 %826 }
 0x1eb   : > { %2316 = vmatpush1.bf16.msra.mxu0 %v2315_v42  ;;  %v841_v25 = vsel %vm836_vm4, %v827_v38, %v800_v21  ;;  %v868_v52 = vsel %vm836_vm4, %v800_v21, %v827_v38 }
 0x1ec   : > { %v829_v30 = vpop.permute.xlu1 %828  ;;  %v892_v43 = vmul.f32 %v3599_v1, %v868_v52  ;;  %v893_v40 = vmul.f32 %v3602_v34, %v841_v25 }
 0x1ed   : > { %v842_v59 = vsel %vm836_vm4, %v829_v30, %v802_v32  ;;  %v869_v49 = vsel %vm836_vm4, %v802_v32, %v829_v30 }
 0x1ee   : > { %v894_v35 = vmul.f32 %v3599_v1, %v869_v49  ;;  %v895_v31 = vmul.f32 %v3602_v34, %v842_v59  ;;  %v1496_v9 = vpop.permute.xlu0 %1495  ;;  %v3792_v49 = vld [vmem:[#allocation16_spill] sm:$0xff] }
 0x1f0   : > { %v1498_v11 = vpop.permute.xlu1 %1497  ;;  %v2217_v50 = vpack.c.bf16 %v895_v31, %v893_v40  ;;  %v2219_v58 = vpack.c.bf16 %v894_v35, %v892_v43  ;;  %v3791_v40 = vld [vmem:[#allocation15_spill] sm:$0xff] }
 0x1f1   : > { %v1532_v26 = vsel %vm1531_vm5, %v1496_v9, %v1498_v11  ;;  %v1568_v0 = vsel %vm1531_vm5, %v1498_v11, %v1496_v9 }
 0x1f2   : > { %2218 = vmatprep.subr.bf16.mxu1 %v2217_v50  ;;  %v1500_v37 = vpop.permute.xlu0 %1499  ;;  %v1588_v56 = vmul.f32 %v3645_v4, %v1532_v26  ;;  %v1589_v28 = vmul.f32 %v3648_v8, %v1568_v0 }
 0x1f3   : > { %2220 = vmatpush1.bf16.msra.mxu1 %v2219_v58 }
 0x1f4   : > { %v1502_v3 = vpop.permute.xlu1 %1501 }
 0x1f5   : > { %v1533_v62 = vsel %vm1531_vm5, %v1500_v37, %v1502_v3  ;;  %v1569_v29 = vsel %vm1531_vm5, %v1502_v3, %v1500_v37 }
 0x1f6   : > { %v1590_v39 = vmul.f32 %v3645_v4, %v1533_v62  ;;  %v1591_v41 = vmul.f32 %v3648_v8, %v1569_v29  ;;  %v804_v46 = vpop.permute.xlu0 %803 }
 0x1f8   : > { %v2319_v47 = vpack.c.bf16 %v1590_v39, %v1588_v56  ;;  %v806_v23 = vpop.permute.xlu1 %805  ;;  %v2317_v18 = vpack.c.bf16 %v1591_v41, %v1589_v28 }
 0x1fa   : > { %2318 = vmatprep.subr.bf16.mxu0 %v2317_v18  ;;  %v831_v13 = vpop.permute.xlu0 %830 }
 0x1fb   : > { %2320 = vmatpush1.bf16.msra.mxu0 %v2319_v47  ;;  %v843_v19 = vsel %vm836_vm4, %v831_v13, %v804_v46  ;;  %v870_v53 = vsel %vm836_vm4, %v804_v46, %v831_v13 }
 0x1fc   : > { %v833_v20 = vpop.permute.xlu1 %832  ;;  %v896_v48 = vmul.f32 %v3599_v1, %v870_v53  ;;  %v897_v2 = vmul.f32 %v3602_v34, %v843_v19 }
 0x1fd   : > { %v844_v17 = vsel %vm836_vm4, %v833_v20, %v806_v23  ;;  %v871_v36 = vsel %vm836_vm4, %v806_v23, %v833_v20 }
 0x1fe   : > { %v898_v54 = vmul.f32 %v3599_v1, %v871_v36  ;;  %v899_v22 = vmul.f32 %v3602_v34, %v844_v17  ;;  %v1504_v51 = vpop.permute.xlu0 %1503 }
 0x200   : > { %v1506_v44 = vpop.permute.xlu1 %1505  ;;  %v2221_v7 = vpack.c.bf16 %v899_v22, %v897_v2  ;;  %v2223_v63 = vpack.c.bf16 %v898_v54, %v896_v48 }
 0x201   : > { %v1534_v12 = vsel %vm1531_vm5, %v1504_v51, %v1506_v44  ;;  %v1570_v14 = vsel %vm1531_vm5, %v1506_v44, %v1504_v51 }
 0x202   : > { %2222 = vmatprep.subr.bf16.mxu1 %v2221_v7  ;;  %v1508_v5 = vpop.permute.xlu0 %1507  ;;  %v1592_v33 = vmul.f32 %v3645_v4, %v1534_v12  ;;  %v1593_v57 = vmul.f32 %v3648_v8, %v1570_v14 }
 0x203   : > { %2224 = vmatpush1.bf16.msra.mxu1 %v2223_v63 }
 0x204   : > { %v1510_v6 = vpop.permute.xlu1 %1509 }
 0x205   : > { %v1535_v15 = vsel %vm1531_vm5, %v1508_v5, %v1510_v6  ;;  %v1571_v24 = vsel %vm1531_vm5, %v1510_v6, %v1508_v5 }
 0x206   : > { %v1594_v10 = vmul.f32 %v3645_v4, %v1535_v15  ;;  %v1595_v55 = vmul.f32 %v3648_v8, %v1571_v24  ;;  %v808_v60 = vpop.permute.xlu0 %807 }
 0x208   : > { %v2323_v27 = vpack.c.bf16 %v1594_v10, %v1592_v33  ;;  %v835_v16 = vpop.permute.xlu1 %834  ;;  %v2321_v21 = vpack.c.bf16 %v1595_v55, %v1593_v57 }
 0x209   : > { %v845_v42 = vsel %vm836_vm4, %v835_v16, %v808_v60  ;;  %v872_v32 = vsel %vm836_vm4, %v808_v60, %v835_v16 }
 0x20a   : > { %v900_v61 = vmul.f32 %v3599_v1, %v872_v32  ;;  %v901_v38 = vmul.f32 %v3602_v34, %v845_v42  ;;  %2322 = vmatprep.subr.bf16.mxu0 %v2321_v21  ;;  %v923_v25 = vpop.permute.xlu0 %922 }
 0x20b   : > { %2324 = vmatpush1.bf16.msra.mxu0 %v2323_v27 }
 0x20c   : > { %v950_v52 = vpop.permute.xlu1 %949 }
 0x20d   : > { %v968_v30 = vsel %vm967_vm13, %v950_v52, %v923_v25  ;;  %v995_v43 = vsel %vm967_vm13, %v923_v25, %v950_v52 }
 0x20e   : > { %v1015_v59 = vmul.f32 %v3791_v40, %v995_v43  ;;  %v1016_v35 = vmul.f32 %v3792_v49, %v968_v30  ;;  %v1512_v31 = vpop.permute.xlu0 %1511 }
 0x210   : > { %v1514_v9 = vpop.permute.xlu1 %1513  ;;  %v2225_v45 = vpack.c.bf16 %v1016_v35, %v901_v38  ;;  %v2227_v11 = vpack.c.bf16 %v1015_v59, %v900_v61 }
 0x211   : > { %v1536_v1 = vsel %vm1531_vm5, %v1512_v31, %v1514_v9  ;;  %v1572_v34 = vsel %vm1531_vm5, %v1514_v9, %v1512_v31 }
 0x212   : > { %2226 = vmatprep.subr.bf16.mxu1 %v2225_v45  ;;  %v1516_v50 = vpop.permute.xlu0 %1515  ;;  %v1596_v37 = vmul.f32 %v3645_v4, %v1536_v1  ;;  %v1597_v3 = vmul.f32 %v3648_v8, %v1572_v34  ;;  %v1624_v1 = vld [vmem:[#allocation10] sm:$0xff] }
 0x213   : > { %2228 = vmatpush1.bf16.msra.mxu1 %v2227_v11  ;;  %v1628_v34 = vld [vmem:[#allocation10 + $0x20] sm:$0xff] }
 0x214   : > { %v1518_v58 = vpop.permute.xlu1 %1517 }
 0x215   : > { %v1537_v26 = vsel %vm1531_vm5, %v1516_v50, %v1518_v58  ;;  %v1573_v0 = vsel %vm1531_vm5, %v1518_v58, %v1516_v50 }
 0x216   : > { %v1598_v62 = vmul.f32 %v3645_v4, %v1537_v26  ;;  %v1599_v29 = vmul.f32 %v3648_v8, %v1573_v0  ;;  %v925_v56 = vpop.permute.xlu0 %924 }
 0x218   : > { %v2327_v28 = vpack.c.bf16 %v1598_v62, %v1596_v37  ;;  %v927_v39 = vpop.permute.xlu1 %926  ;;  %v2325_v41 = vpack.c.bf16 %v1599_v29, %v1597_v3 }
 0x21a   : > { %2326 = vmatprep.subr.bf16.mxu0 %v2325_v41  ;;  %v952_v46 = vpop.permute.xlu0 %951 }
 0x21b   : > { %2328 = vmatpush1.bf16.msra.mxu0 %v2327_v28  ;;  %v969_v47 = vsel %vm967_vm13, %v952_v46, %v925_v56  ;;  %v996_v23 = vsel %vm967_vm13, %v925_v56, %v952_v46 }
 0x21c   : > { %v954_v18 = vpop.permute.xlu1 %953  ;;  %v1017_v13 = vmul.f32 %v3791_v40, %v996_v23  ;;  %v1018_v19 = vmul.f32 %v3792_v49, %v969_v47 }
 0x21d   : > { %v970_v53 = vsel %vm967_vm13, %v954_v18, %v927_v39  ;;  %v997_v20 = vsel %vm967_vm13, %v927_v39, %v954_v18 }
 0x21e   : > { %v1019_v48 = vmul.f32 %v3791_v40, %v997_v20  ;;  %v1020_v2 = vmul.f32 %v3792_v49, %v970_v53  ;;  %v1520_v17 = vpop.permute.xlu0 %1519 }
 0x220   : > { %v1522_v36 = vpop.permute.xlu1 %1521  ;;  %v2229_v54 = vpack.c.bf16 %v1020_v2, %v1018_v19  ;;  %v2231_v22 = vpack.c.bf16 %v1019_v48, %v1017_v13  ;;  %v2030_v13 = vstv %s2027_s27 }
 0x221   : > { %v1538_v51 = vsel %vm1531_vm5, %v1520_v17, %v1522_v36  ;;  %v1574_v44 = vsel %vm1531_vm5, %v1522_v36, %v1520_v17 }
 0x222   : > { %2230 = vmatprep.subr.bf16.mxu1 %v2229_v54  ;;  %v1524_v7 = vpop.permute.xlu0 %1523  ;;  %v1600_v5 = vmul.f32 %v3645_v4, %v1538_v51  ;;  %v1601_v6 = vmul.f32 %v3648_v8, %v1574_v44 }
 0x223   : > { %2232 = vmatpush1.bf16.msra.mxu1 %v2231_v22 }
 0x224   : > { %v1526_v63 = vpop.permute.xlu1 %1525 }
 0x225   : > { %v1539_v12 = vsel %vm1531_vm5, %v1524_v7, %v1526_v63  ;;  %v1575_v14 = vsel %vm1531_vm5, %v1526_v63, %v1524_v7 }
 0x226   : > { %v1602_v15 = vmul.f32 %v3645_v4, %v1539_v12  ;;  %v1603_v24 = vmul.f32 %v3648_v8, %v1575_v14  ;;  %v929_v33 = vpop.permute.xlu0 %928 }
 0x228   : > { %v2331_v57 = vpack.c.bf16 %v1602_v15, %v1600_v5  ;;  %v931_v10 = vpop.permute.xlu1 %930  ;;  %v2329_v55 = vpack.c.bf16 %v1603_v24, %v1601_v6 }
 0x22a   : > { %2330 = vmatprep.subr.bf16.mxu0 %v2329_v55  ;;  %v956_v60 = vpop.permute.xlu0 %955 }
 0x22b   : > { %2332 = vmatpush1.bf16.msra.mxu0 %v2331_v57  ;;  %v971_v27 = vsel %vm967_vm13, %v956_v60, %v929_v33  ;;  %v998_v16 = vsel %vm967_vm13, %v929_v33, %v956_v60 }
 0x22c   : > { %v958_v21 = vpop.permute.xlu1 %957  ;;  %v1021_v42 = vmul.f32 %v3791_v40, %v998_v16  ;;  %v1022_v32 = vmul.f32 %v3792_v49, %v971_v27 }
 0x22d   : > { %v972_v61 = vsel %vm967_vm13, %v958_v21, %v931_v10  ;;  %v999_v38 = vsel %vm967_vm13, %v931_v10, %v958_v21 }
 0x22e   : > { %v1023_v25 = vmul.f32 %v3791_v40, %v999_v38  ;;  %v1024_v52 = vmul.f32 %v3792_v49, %v972_v61  ;;  %v1528_v30 = vpop.permute.xlu0 %1527 }
 0x230   : > { %v1530_v43 = vpop.permute.xlu1 %1529  ;;  %v2233_v59 = vpack.c.bf16 %v1024_v52, %v1022_v32  ;;  %v2235_v35 = vpack.c.bf16 %v1023_v25, %v1021_v42 }
 0x231   : > { %v1540_v31 = vsel %vm1531_vm5, %v1528_v30, %v1530_v43  ;;  %v1576_v9 = vsel %vm1531_vm5, %v1530_v43, %v1528_v30 }
 0x232   : > { %v1604_v45 = vmul.f32 %v3645_v4, %v1540_v31  ;;  %v1605_v11 = vmul.f32 %v3648_v8, %v1576_v9  ;;  %2234 = vmatprep.subr.bf16.mxu1 %v2233_v59 }
 0x233   : > { %2236 = vmatpush1.bf16.msra.mxu1 %v2235_v35 }
 0x234   : > { %1970 = vmatprep.subr.mxu0 %v1605_v11 }
 0x235   : > { %1971 = vmatpush1.msra.mxu0 %v1604_v45 }
 0x236   : > { %1861 = vmatmul.mubr.f32.vlgmr.msra.gmra.mrb[0].mxu1 %v1624_v1  ;;  %2003 = vmatmul.mubr.f32.vlgmr.msra.gmra.mrb[0].mxu0 %v1628_v34 }
 0x309   : > { %v1862_v40 = vpop.f32.mrb[0].mxu1  ;;  %v2004_v49 = vpop.f32.mrb[0].mxu0 }
 0x30a   : > { %v2333_v50 = vadd.f32 %v2004_v49, %v1862_v40  ;;  %v1864_v58 = vpop.f32.mrb[1].mxu1  ;;  %v2006_v26 = vpop.f32.mrb[1].mxu0 }
 0x30b   : > { %v2334_v0 = vadd.f32 %v2006_v26, %v1864_v58 }
 0x30c   : > { %v2013_v37 = vmul.f32 %v2333_v50, %v2333_v50 }
 0x30d   : > { %v2014_v3 = vmul.f32 %v2334_v0, %v2334_v0  ;;  %v2009_v4 = vadd.f32 %v2334_v0, %v2333_v50 }
 0x30f   : > { %2010 = vadd.xlane.f32.xlu0 %v2009_v4  ;;  %v2015_v8 = vadd.f32 %v2014_v3, %v2013_v37 }
 0x311   : > { %2016 = vadd.xlane.f32.xlu1 %v2015_v8 }
 0x39c   : > { %v2011_v62 = vpop.xlane.xlu0 %2010 }
 0x39d   : > { %v2012_v29 = vmul.f32 0.00390625, %v2011_v62 }
 0x39e   : > { %v2017_v56 = vpop.xlane.xlu1 %2016 }
 0x39f   : > { %v2018_v28 = vmul.f32 0.00390625, %v2017_v56  ;;  %v2019_v39 = vmul.f32 %v2012_v29, %v2012_v29  ;;  %v2021_v47 = vsub.f32 %v2333_v50, %v2012_v29  ;;  %v2022_v23 = vsub.f32 %v2334_v0, %v2012_v29 }
 0x3a1   : > { %v2020_v41 = vsub.f32 %v2018_v28, %v2019_v39 }
 0x3a3   : > { %v2023_v46 = vadd.f32 1e-05, %v2020_v41 }
 0x3a5   : > { %2419 = vrsqrt.f32 %v2023_v46 }
 0x3af   : > { %v2420_v18 = vpop.eup %2419 }
 0x3b0   : > { %v2025_v19 = vmul.f32 %v2420_v18, %v2021_v47  ;;  %v2026_v53 = vmul.f32 %v2420_v18, %v2022_v23 }
 0x3b2   : > { %vm2028_vm6 = vcmp.ge.f32.partialorder %v2025_v19, 0.0  ;;  %vm2029_vm7 = vcmp.ge.f32.partialorder %v2026_v53, 0.0  ;;  %v2031_v20 = vmul.f32 %v2030_v13, %v2025_v19  ;;  %v2032_v48 = vmul.f32 %v2030_v13, %v2026_v53 }
 0x3b4   : > { %v2033_v2 = vsel %vm2028_vm6, %v2025_v19, %v2031_v20  ;;  %v2034_v17 = vsel %vm2029_vm7, %v2026_v53, %v2032_v48 }
 0x3b5   : > { %2035 = vst [vmem:[%s241_s14] sm:$0xff] %v2033_v2  ;;  %2036 = vst [vmem:[%s241_s14 + $0x8] sm:$0xff] %v2034_v17 }
 0x3b6   : > { %2533 = shalt.err (!%p2530_p2)
}
 0x3b7   : > { %s2534_s16 = scalar_lea.hbm %s3723_s6, 256  ;;  %s2538_s5 = scalar_lea.hbm %s3771_s4, 512 }
 0x3b8   : > { %p2535_p13 = scmp.ne.s32.totalorder %s3723_s6, %s2534_s16  ;;  %p2539_p4 = scmp.lt.u32.totalorder %s3723_s6, %s3771_s4 }
 0x3b9   : > { %p2540_p5 = scmp.lt.u32.totalorder %s2538_s5, %s2534_s16  ;;  %p2542_p8 = scmp.lt.u32.totalorder %s2534_s16, %s3723_s6 }
 0x3ba   : > { %p2536_p6 = pnand %p2535_p13, %p3793_p0 }
 0x3bb   : > { %p2541_p11 = por %p2540_p5, %p2539_p4 }
 0x3bc   : > { %p2537_p10 = pneg %p2536_p6 }
 0x3bd   : > { %p2543_p1 = por %p2542_p8, %p2541_p11 }
 0x3bf   : > { %p2544_p3 = pnand %p2543_p1, %p2537_p10 }
 0x3c1   : > { %2547 = shalt.err (!%p2544_p3)
}
 0x3c2   : > { %2347 = dma.vmem_to_hbm [thread:$0]  (%p3793_p0), %s3725_s29, 256, %s3723_s6, %s2038_s0  }
 0x3c3 PF: > { %s2064_s27 = sand.u32 1, %s2578_s17   ;;  %p3794_p7 = scmp.ne.s32.totalorder %s3780_s23, 0 }
 0x3c4   : > { %p3795_p9 = scmp.ge.s32.totalorder %s2590_s20, 2  ;;  %s2065_s10 = scalar_lea.sflag [#allocation7], %s2064_s27 }
 0x3c6   : > { %p2361_p12 = pnand %p3795_p9, %p3794_p7 }
 0x3c8   : > { %2573 = dma.done.wait (!%p2361_p12), %s2065_s10, 256  }
 0x3c9   : > { %2575 = vsyncadd (!%p2361_p12), %s2065_s10, 4294967040  ;;  %p19_p2 = scmp.ge.s32.totalorder %s2745_s9, 4   ;;  %s3796_s17 = smov %s2582_s18 }
 0x3ca   : > { %s3797_s18 = smov %s2586_s19  ;;  %s3798_s19 = smov %s2761_s12 }
 0x3cb   : > { %s3799_s20 = smov %s2745_s9  ;;  %21 = sbr.rel (!%p19_p2) target bundleno = 8 (0x8), region = 97 }
 0x3d2   :  { %2070 = vsyncpa [#allocation6], 1 }
 0x3d3   :  { %2072 = vsyncpa [#allocation6 + $0x1], 1 }
 0x3d4   :  { %2073 = vsyncpa [#allocation9], 1 }
 0x3d5   :  { %2074 = vsyncpa [#allocation7], 1 }
 0x3d6   :  { %2076 = vsyncpa [#allocation7 + $0x1], 1 }

</bundles_post_ra>
